<compile_context>
chip_gen: v7x
topology: tpu7x:2x2x1
jax: 0.10.0
libtpu: 0.0.40
codegen_flags: <defaults>
</compile_context>

<pallas_src>
import functools

import jax
import jax.numpy as jnp
from jax import lax
from jax.experimental import pallas as pl
from jax.experimental.pallas import tpu as pltpu


def _round_up(x, m):
    return (x + m - 1) // m * m


def _pad2d(a, rows, cols):
    r, c = a.shape
    return jnp.pad(a, ((0, rows - r), (0, cols - c)))


# ----------------------------------------------------------------------------
# Kernel A: tiled bf16 matmul (f32 accumulation) + single-pass BN statistics
# (per-channel sum and sum-of-squares accumulated across the M-tile axis).
# ----------------------------------------------------------------------------
def _matmul_stats_kernel(p_ref, w_ref, y_ref, sum_ref, ssq_ref):
    i = pl.program_id(0)

    @pl.when(i == 0)
    def _():
        sum_ref[...] = jnp.zeros_like(sum_ref)
        ssq_ref[...] = jnp.zeros_like(ssq_ref)

    y = jnp.dot(p_ref[...], w_ref[...], preferred_element_type=jnp.float32)
    sum_ref[...] += jnp.sum(y, axis=0, keepdims=True)
    ssq_ref[...] += jnp.sum(y * y, axis=0, keepdims=True)
    y_ref[...] = y.astype(y_ref.dtype)


# ----------------------------------------------------------------------------
# Kernel B: BN apply (per-channel scale/shift) + LeakyReLU
# (+ optional fused residual average for the block output).
# ----------------------------------------------------------------------------
def _bn_lrelu_kernel(y_ref, sc_ref, sh_ref, o_ref, *, alpha):
    y = y_ref[...].astype(jnp.float32)
    yb = y * sc_ref[...] + sh_ref[...]
    o_ref[...] = jnp.where(yb > 0, yb, alpha * yb).astype(o_ref.dtype)


def _bn_lrelu_res_kernel(y_ref, sc_ref, sh_ref, r_ref, o_ref, *, alpha):
    y = y_ref[...].astype(jnp.float32)
    yb = y * sc_ref[...] + sh_ref[...]
    act = jnp.where(yb > 0, yb, alpha * yb)
    o_ref[...] = ((act + r_ref[...].astype(jnp.float32)) * 0.5).astype(o_ref.dtype)


# ----------------------------------------------------------------------------
# Fused conv-as-matmul -> BatchNorm(train stats) -> LeakyReLU (+ residual avg)
# ----------------------------------------------------------------------------
def conv_bn_lrelu(patches, w_kc, gamma, beta, cout, residual=None, *,
                  alpha=0.2, eps=1e-5, out_dtype=jnp.bfloat16,
                  tm=512, vmem_limit_bytes=None):
    """patches: (M, K); w_kc: (K, cout); gamma/beta: (1, cout);
    residual: (M, Cpad) or None.  Returns (M, Cpad) with channels >= cout
    exactly zero, where Cpad = round_up(cout, 128)."""
    M, K = patches.shape
    Kp = _round_up(K, 128)
    Cp = _round_up(cout, 128)
    TM = min(tm, _round_up(M, 8))       # largest row tile (multiple of 8)
    Mp = _round_up(M, TM)
    grid_m = Mp // TM

    # bf16 MXU operands; zero pad keeps the matmul exact.
    p = _pad2d(patches.astype(jnp.bfloat16), Mp, Kp)
    w = _pad2d(w_kc.astype(jnp.bfloat16), Kp, Cp)

    def _cparams(sem):
        # NOTE: for large tiles raise vmem_limit_bytes (keep ~2x headroom on
        # v7x's 64 MiB physical VMEM; v5e default scoped limit is 16 MiB).
        return pltpu.CompilerParams(dimension_semantics=(sem,),
                                    vmem_limit_bytes=vmem_limit_bytes)

    # Phase 1: matmul + statistics. Row-tile axis is a reduction for the
    # stats accumulators -> "arbitrary".
    y, s1, s2 = pl.pallas_call(
        _matmul_stats_kernel,
        out_shape=(
            jax.ShapeDtypeStruct((Mp, Cp), jnp.bfloat16),   # pre-BN activations
            jax.ShapeDtypeStruct((1, Cp), jnp.float32),     # sum(y)
            jax.ShapeDtypeStruct((1, Cp), jnp.float32),     # sum(y*y)
        ),
        grid=(grid_m,),
        in_specs=[
            pl.BlockSpec((TM, Kp), lambda i: (i, 0)),
            pl.BlockSpec((Kp, Cp), lambda i: (0, 0)),       # weights resident
        ],
        out_specs=(
            pl.BlockSpec((TM, Cp), lambda i: (i, 0)),
            pl.BlockSpec((1, Cp), lambda i: (0, 0)),        # accumulator
            pl.BlockSpec((1, Cp), lambda i: (0, 0)),        # accumulator
        ),
        compiler_params=_cparams("arbitrary"),
    )(p, w)

    # Tiny per-channel BN fold in JAX (f32). Zero-padded rows contribute
    # exact zeros to both sums, so dividing by the true M keeps stats exact.
    mu = s1 / M
    var = jnp.maximum(s2 / M - mu * mu, 0.0)
    inv = lax.rsqrt(var + eps)
    g = _pad2d(gamma.astype(jnp.float32), 1, Cp)            # padded gamma = 0
    b = _pad2d(beta.astype(jnp.float32), 1, Cp)             # padded beta  = 0
    scale = g * inv
    shift = b - mu * scale

    # Phase 2: normalize + LeakyReLU (+ residual average). Fully parallel.
    in_specs = [
        pl.BlockSpec((TM, Cp), lambda i: (i, 0)),
        pl.BlockSpec((1, Cp), lambda i: (0, 0)),
        pl.BlockSpec((1, Cp), lambda i: (0, 0)),
    ]
    args = [y, scale, shift]
    if residual is None:
        kernel = functools.partial(_bn_lrelu_kernel, alpha=alpha)
    else:
        kernel = functools.partial(_bn_lrelu_res_kernel, alpha=alpha)
        in_specs.append(pl.BlockSpec((TM, Cp), lambda i: (i, 0)))
        args.append(_pad2d(residual.astype(jnp.bfloat16), Mp, Cp))

    out = pl.pallas_call(
        kernel,
        out_shape=jax.ShapeDtypeStruct((Mp, Cp), out_dtype),
        grid=(grid_m,),
        in_specs=in_specs,
        out_specs=pl.BlockSpec((TM, Cp), lambda i: (i, 0)),
        compiler_params=_cparams("parallel"),
    )(*args)
    return out[:M]                                          # keep padded channels


# ----------------------------------------------------------------------------
# Plain-JAX glue: im2col, avg-pool, spectral norm, weight layout
# ----------------------------------------------------------------------------
def im2col(x_nhwc, k, stride, pad):
    N, H, W, C = x_nhwc.shape
    xp = jnp.pad(x_nhwc, ((0, 0), (pad, pad), (pad, pad), (0, 0)))
    Ho = (H + 2 * pad - k) // stride + 1
    Wo = (W + 2 * pad - k) // stride + 1
    cols = []
    for i in range(k):
        for j in range(k):
            cols.append(xp[:, i:i + stride * Ho:stride,
                           j:j + stride * Wo:stride, :])
    p = jnp.stack(cols, axis=3)                       # (N, Ho, Wo, k*k, C)
    return p.reshape(N * Ho * Wo, k * k * C), (N, Ho, Wo)


def avg_pool_2x2(x_nhwc):
    N, H, W, C = x_nhwc.shape
    return x_nhwc.reshape(N, H // 2, 2, W // 2, 2, C).mean(axis=(2, 4))


def spectral_normalize(w, key, n_iter=1, eps=1e-12):
    """PyTorch-style spectral_norm (one power iteration, fresh normal u)."""
    cout = w.shape[0]
    wm = w.reshape(cout, -1)
    u = jax.random.normal(key, (cout,), dtype=w.dtype)
    u = u / (jnp.linalg.norm(u) + eps)
    v = jnp.zeros((wm.shape[1],), w.dtype)
    for _ in range(n_iter):
        v = wm.T @ u
        v = v / (jnp.linalg.norm(v) + eps)
        u = wm @ v
        u = u / (jnp.linalg.norm(u) + eps)
    sigma = u @ (wm @ v)
    return w / sigma


def conv_weight_to_matmul(w_pt, cin_pad=None):
    """(Cout, Cin, kh, kw) -> (kh*kw*Cin[_pad], Cout), matching im2col order."""
    cout, cin, kh, kw = w_pt.shape
    w = jnp.transpose(w_pt, (2, 3, 1, 0))             # (kh, kw, cin, cout)
    if cin_pad is not None and cin_pad > cin:
        w = jnp.pad(w, ((0, 0), (0, 0), (0, cin_pad - cin), (0, 0)))
        cin = cin_pad
    return w.reshape(kh * kw * cin, cout)


# ----------------------------------------------------------------------------
# DownBlockComp forward
# ----------------------------------------------------------------------------
def init_params(key, in_planes, out_planes):
    k1, k2, k3, s1, s2, s3 = jax.random.split(key, 6)
    cpad = _round_up(out_planes, 128)
    w_main1 = 0.1 * jax.random.normal(k1, (out_planes, in_planes, 4, 4), jnp.float32)
    w_main2 = 0.1 * jax.random.normal(k2, (out_planes, out_planes, 3, 3), jnp.float32)
    w_dir = 0.1 * jax.random.normal(k3, (out_planes, in_planes, 1, 1), jnp.float32)
    # spectral norm applied at forward time in PyTorch; applied here once (glue)
    w_main1 = spectral_normalize(w_main1, s1)
    w_main2 = spectral_normalize(w_main2, s2)
    w_dir = spectral_normalize(w_dir, s3)
    ones = jnp.ones((1, out_planes), jnp.float32)     # BatchNorm2d default gamma
    zeros = jnp.zeros((1, out_planes), jnp.float32)   # BatchNorm2d default beta
    return dict(
        w_main1=conv_weight_to_matmul(w_main1),
        # conv2 consumes the channel-padded (lane-dense) m1 activation, so its
        # input-channel axis is zero-padded to the same width up front.
        w_main2=conv_weight_to_matmul(w_main2, cin_pad=cpad),
        w_dir=conv_weight_to_matmul(w_dir),
        g1=ones, b1=zeros, g2=ones, b2=zeros, gd=ones, bd=zeros,
    )


def down_block_comp_forward(params, x_nchw):
    x = jnp.transpose(x_nchw, (0, 2, 3, 1))           # NCHW -> NHWC
    N, H, W, Cin = x.shape
    Cout = params["w_dir"].shape[1]

    # --- direct path: AvgPool(2,2) -> 1x1 conv -> BN -> LeakyReLU (bf16 out)
    xd = avg_pool_2x2(x)                              # (N, H/2, W/2, Cin)
    pd = xd.reshape(-1, Cin)                          # 1x1-conv "patches"
    direct = conv_bn_lrelu(pd, params["w_dir"], params["gd"], params["bd"], Cout)

    # --- main path: conv4x4 s2 p1 -> BN -> LReLU -> conv3x3 s1 p1 -> BN -> LReLU
    p1, (n, ho, wo) = im2col(x.astype(jnp.bfloat16), 4, 2, 1)
    m1 = conv_bn_lrelu(p1, params["w_main1"], params["g1"], params["b1"], Cout)
    cpad = m1.shape[1]
    m1 = m1.reshape(n, ho, wo, cpad)                  # channel-padded, bf16
    p2, _ = im2col(m1, 3, 1, 1)
    # final kernel fuses (main + direct) / 2
    out = conv_bn_lrelu(p2, params["w_main2"], params["g2"], params["b2"], Cout,
                        residual=direct, out_dtype=jnp.float32)
    out = out[:, :Cout].reshape(n, ho, wo, Cout)
    return jnp.transpose(out, (0, 3, 1, 2))           # back to NCHW


if __name__ == "__main__":
    key = jax.random.PRNGKey(0)
    kx, kp = jax.random.split(key)

    in_planes, out_planes = 4, 8
    x = jax.random.normal(kx, (2, in_planes, 16, 16), jnp.float32)  # NCHW
    params = init_params(kp, in_planes, out_planes)

    fwd = jax.jit(down_block_comp_forward)
    y = fwd(params, x)
    jax.block_until_ready(y)
    assert y.shape == (2, out_planes, 8, 8), y.shape
    assert jnp.all(jnp.isfinite(y))
    print("KERNEL_OK")
</pallas_src>

<mosaic_0001>
module attributes {stable_mosaic.version = 11 : i64} {
  func.func @_matmul_stats_kernel(%arg0: i32, %arg1: memref<128x128xbf16, #tpu.memory_space<vmem>>, %arg2: memref<128x128xbf16, #tpu.memory_space<vmem>>, %arg3: memref<128x128xbf16, #tpu.memory_space<vmem>>, %arg4: memref<1x128xf32, #tpu.memory_space<vmem>>, %arg5: memref<1x128xf32, #tpu.memory_space<vmem>>) attributes {dimension_semantics = [#tpu.dimension_semantics<arbitrary>], iteration_bounds = array<i64: 1>, scalar_prefetch = 0 : i64, scratch_operands = 0 : i64, tpu.core_type = #tpu.core_type<tc>, window_params = [{transform_indices = @transform_0, window_bounds = array<i64: 128, 128>}, {pipeline_mode = #tpu.pipeline_mode<synchronous>, transform_indices = @transform_1, window_bounds = array<i64: 128, 128>}, {transform_indices = @transform_2, window_bounds = array<i64: 128, 128>}, {pipeline_mode = #tpu.pipeline_mode<synchronous>, transform_indices = @transform_3, window_bounds = array<i64: 1, 128>}, {pipeline_mode = #tpu.pipeline_mode<synchronous>, transform_indices = @transform_4, window_bounds = array<i64: 1, 128>}]} {
    %c0_i32 = arith.constant 0 : i32
    %0 = arith.cmpi eq, %arg0, %c0_i32 : i32
    %1 = arith.extui %0 : i1 to i32
    %c0_i32_0 = arith.constant 0 : i32
    %2 = arith.cmpi ne, %1, %c0_i32_0 : i32
    scf.if %2 {
      %cst_16 = arith.constant 0.000000e+00 : f32
      %19 = vector.broadcast %cst_16 : f32 to vector<1x128xf32>
      %c0_17 = arith.constant 0 : index
      %c0_18 = arith.constant 0 : index
      %20 = vector.load %arg4[%c0_17, %c0_18] : memref<1x128xf32, #tpu.memory_space<vmem>>, vector<1x128xf32>
      tpu.vector_store %arg4[%c0_17, %c0_18], %19 {strides = array<i32>} : memref<1x128xf32, #tpu.memory_space<vmem>>, vector<1x128xf32>,
      %cst_19 = arith.constant 0.000000e+00 : f32
      %21 = vector.broadcast %cst_19 : f32 to vector<1x128xf32>
      %c0_20 = arith.constant 0 : index
      %c0_21 = arith.constant 0 : index
      %22 = vector.load %arg5[%c0_20, %c0_21] : memref<1x128xf32, #tpu.memory_space<vmem>>, vector<1x128xf32>
      tpu.vector_store %arg5[%c0_20, %c0_21], %21 {strides = array<i32>} : memref<1x128xf32, #tpu.memory_space<vmem>>, vector<1x128xf32>,
    } else {
    }
    %c0 = arith.constant 0 : index
    %c0_1 = arith.constant 0 : index
    %3 = vector.load %arg1[%c0, %c0_1] : memref<128x128xbf16, #tpu.memory_space<vmem>>, vector<128x128xbf16>
    %c0_2 = arith.constant 0 : index
    %c0_3 = arith.constant 0 : index
    %4 = vector.load %arg2[%c0_2, %c0_3] : memref<128x128xbf16, #tpu.memory_space<vmem>>, vector<128x128xbf16>
    %cst = arith.constant dense<0.000000e+00> : vector<128x128xf32>
    %5 = tpu.matmul %3, %4, %cst {dimension_numbers = #tpu.dot_dimension_numbers<[1], [0], [0], [1], [0, 0, 1, 1], [], []>} : vector<128x128xbf16>, vector<128x128xbf16>, vector<128x128xf32> -> vector<128x128xf32>
    %c0_4 = arith.constant 0 : index
    %c0_5 = arith.constant 0 : index
    %6 = vector.load %arg4[%c0_4, %c0_5] : memref<1x128xf32, #tpu.memory_space<vmem>>, vector<1x128xf32>
    %cst_6 = arith.constant dense<0.000000e+00> : vector<128xf32>
    %7 = vector.multi_reduction <add>, %5, %cst_6 [0] : vector<128x128xf32> to vector<128xf32>
    %8 = vector.shape_cast %7 : vector<128xf32> to vector<1x128xf32>
    %9 = arith.addf %6, %8 : vector<1x128xf32>
    %c0_7 = arith.constant 0 : index
    %c0_8 = arith.constant 0 : index
    %10 = vector.load %arg4[%c0_7, %c0_8] : memref<1x128xf32, #tpu.memory_space<vmem>>, vector<1x128xf32>
    tpu.vector_store %arg4[%c0_7, %c0_8], %9 {strides = array<i32>} : memref<1x128xf32, #tpu.memory_space<vmem>>, vector<1x128xf32>,
    %c0_9 = arith.constant 0 : index
    %c0_10 = arith.constant 0 : index
    %11 = vector.load %arg5[%c0_9, %c0_10] : memref<1x128xf32, #tpu.memory_space<vmem>>, vector<1x128xf32>
    %12 = arith.mulf %5, %5 : vector<128x128xf32>
    %cst_11 = arith.constant dense<0.000000e+00> : vector<128xf32>
    %13 = vector.multi_reduction <add>, %12, %cst_11 [0] : vector<128x128xf32> to vector<128xf32>
    %14 = vector.shape_cast %13 : vector<128xf32> to vector<1x128xf32>
    %15 = arith.addf %11, %14 : vector<1x128xf32>
    %c0_12 = arith.constant 0 : index
    %c0_13 = arith.constant 0 : index
    %16 = vector.load %arg5[%c0_12, %c0_13] : memref<1x128xf32, #tpu.memory_space<vmem>>, vector<1x128xf32>
    tpu.vector_store %arg5[%c0_12, %c0_13], %15 {strides = array<i32>} : memref<1x128xf32, #tpu.memory_space<vmem>>, vector<1x128xf32>,
    %17 = arith.truncf %5 : vector<128x128xf32> to vector<128x128xbf16>
    %c0_14 = arith.constant 0 : index
    %c0_15 = arith.constant 0 : index
    %18 = vector.load %arg3[%c0_14, %c0_15] : memref<128x128xbf16, #tpu.memory_space<vmem>>, vector<128x128xbf16>
    tpu.vector_store %arg3[%c0_14, %c0_15], %17 {strides = array<i32>} : memref<128x128xbf16, #tpu.memory_space<vmem>>, vector<128x128xbf16>,
    return
  }
  func.func @transform_0(%arg0: i32) -> (i32, i32) {
    %c0_i32 = arith.constant 0 : i32
    %c0_i32_0 = arith.constant 0 : i32
    return %arg0, %c0_i32 : i32, i32
  }
  func.func @transform_1(%arg0: i32) -> (i32, i32) {
    %c0_i32 = arith.constant 0 : i32
    %c0_i32_0 = arith.constant 0 : i32
    %c0_i32_1 = arith.constant 0 : i32
    return %c0_i32, %c0_i32_0 : i32, i32
  }
  func.func @transform_2(%arg0: i32) -> (i32, i32) {
    %c0_i32 = arith.constant 0 : i32
    %c0_i32_0 = arith.constant 0 : i32
    return %arg0, %c0_i32 : i32, i32
  }
  func.func @transform_3(%arg0: i32) -> (i32, i32) {
    %c0_i32 = arith.constant 0 : i32
    %c0_i32_0 = arith.constant 0 : i32
    %c0_i32_1 = arith.constant 0 : i32
    return %c0_i32, %c0_i32_0 : i32, i32
  }
  func.func @transform_4(%arg0: i32) -> (i32, i32) {
    %c0_i32 = arith.constant 0 : i32
    %c0_i32_0 = arith.constant 0 : i32
    %c0_i32_1 = arith.constant 0 : i32
    return %c0_i32, %c0_i32_0 : i32, i32
  }
}

module attributes {stable_mosaic.version = 11 : i64} {
  func.func @_bn_lrelu_kernel(%arg0: i32, %arg1: memref<128x128xbf16, #tpu.memory_space<vmem>>, %arg2: memref<1x128xf32, #tpu.memory_space<vmem>>, %arg3: memref<1x128xf32, #tpu.memory_space<vmem>>, %arg4: memref<128x128xbf16, #tpu.memory_space<vmem>>) attributes {dimension_semantics = [#tpu.dimension_semantics<parallel>], iteration_bounds = array<i64: 1>, scalar_prefetch = 0 : i64, scratch_operands = 0 : i64, tpu.core_type = #tpu.core_type<tc>, window_params = [{transform_indices = @transform_0, window_bounds = array<i64: 128, 128>}, {pipeline_mode = #tpu.pipeline_mode<synchronous>, transform_indices = @transform_1, window_bounds = array<i64: 1, 128>}, {pipeline_mode = #tpu.pipeline_mode<synchronous>, transform_indices = @transform_2, window_bounds = array<i64: 1, 128>}, {transform_indices = @transform_3, window_bounds = array<i64: 128, 128>}]} {
    %c0 = arith.constant 0 : index
    %c0_0 = arith.constant 0 : index
    %0 = vector.load %arg1[%c0, %c0_0] : memref<128x128xbf16, #tpu.memory_space<vmem>>, vector<128x128xbf16>
    %1 = arith.extf %0 : vector<128x128xbf16> to vector<128x128xf32>
    %c0_1 = arith.constant 0 : index
    %c0_2 = arith.constant 0 : index
    %2 = vector.load %arg2[%c0_1, %c0_2] : memref<1x128xf32, #tpu.memory_space<vmem>>, vector<1x128xf32>
    %3 = vector.broadcast %2 : vector<1x128xf32> to vector<128x128xf32>
    %4 = arith.mulf %1, %3 : vector<128x128xf32>
    %c0_3 = arith.constant 0 : index
    %c0_4 = arith.constant 0 : index
    %5 = vector.load %arg3[%c0_3, %c0_4] : memref<1x128xf32, #tpu.memory_space<vmem>>, vector<1x128xf32>
    %6 = vector.broadcast %5 : vector<1x128xf32> to vector<128x128xf32>
    %7 = arith.addf %4, %6 : vector<128x128xf32>
    %cst = arith.constant 0.000000e+00 : f32
    %8 = vector.broadcast %cst : f32 to vector<128x128xf32>
    %9 = arith.cmpf ogt, %7, %8 : vector<128x128xf32>
    %cst_5 = arith.constant 2.000000e-01 : f32
    %10 = vector.broadcast %cst_5 : f32 to vector<128x128xf32>
    %11 = arith.mulf %10, %7 : vector<128x128xf32>
    %12 = arith.select %9, %7, %11 : vector<128x128xi1>, vector<128x128xf32>
    %13 = arith.truncf %12 : vector<128x128xf32> to vector<128x128xbf16>
    %c0_6 = arith.constant 0 : index
    %c0_7 = arith.constant 0 : index
    %14 = vector.load %arg4[%c0_6, %c0_7] : memref<128x128xbf16, #tpu.memory_space<vmem>>, vector<128x128xbf16>
    tpu.vector_store %arg4[%c0_6, %c0_7], %13 {strides = array<i32>} : memref<128x128xbf16, #tpu.memory_space<vmem>>, vector<128x128xbf16>,
    return
  }
  func.func @transform_0(%arg0: i32) -> (i32, i32) {
    %c0_i32 = arith.constant 0 : i32
    %c0_i32_0 = arith.constant 0 : i32
    return %arg0, %c0_i32 : i32, i32
  }
  func.func @transform_1(%arg0: i32) -> (i32, i32) {
    %c0_i32 = arith.constant 0 : i32
    %c0_i32_0 = arith.constant 0 : i32
    %c0_i32_1 = arith.constant 0 : i32
    return %c0_i32, %c0_i32_0 : i32, i32
  }
  func.func @transform_2(%arg0: i32) -> (i32, i32) {
    %c0_i32 = arith.constant 0 : i32
    %c0_i32_0 = arith.constant 0 : i32
    %c0_i32_1 = arith.constant 0 : i32
    return %c0_i32, %c0_i32_0 : i32, i32
  }
  func.func @transform_3(%arg0: i32) -> (i32, i32) {
    %c0_i32 = arith.constant 0 : i32
    %c0_i32_0 = arith.constant 0 : i32
    return %arg0, %c0_i32 : i32, i32
  }
}

module attributes {stable_mosaic.version = 11 : i64} {
  func.func @_matmul_stats_kernel(%arg0: i32, %arg1: memref<128x1152xbf16, #tpu.memory_space<vmem>>, %arg2: memref<1152x128xbf16, #tpu.memory_space<vmem>>, %arg3: memref<128x128xbf16, #tpu.memory_space<vmem>>, %arg4: memref<1x128xf32, #tpu.memory_space<vmem>>, %arg5: memref<1x128xf32, #tpu.memory_space<vmem>>) attributes {dimension_semantics = [#tpu.dimension_semantics<arbitrary>], iteration_bounds = array<i64: 1>, scalar_prefetch = 0 : i64, scratch_operands = 0 : i64, tpu.core_type = #tpu.core_type<tc>, window_params = [{transform_indices = @transform_0, window_bounds = array<i64: 128, 1152>}, {pipeline_mode = #tpu.pipeline_mode<synchronous>, transform_indices = @transform_1, window_bounds = array<i64: 1152, 128>}, {transform_indices = @transform_2, window_bounds = array<i64: 128, 128>}, {pipeline_mode = #tpu.pipeline_mode<synchronous>, transform_indices = @transform_3, window_bounds = array<i64: 1, 128>}, {pipeline_mode = #tpu.pipeline_mode<synchronous>, transform_indices = @transform_4, window_bounds = array<i64: 1, 128>}]} {
    %c0_i32 = arith.constant 0 : i32
    %0 = arith.cmpi eq, %arg0, %c0_i32 : i32
    %1 = arith.extui %0 : i1 to i32
    %c0_i32_0 = arith.constant 0 : i32
    %2 = arith.cmpi ne, %1, %c0_i32_0 : i32
    scf.if %2 {
      %cst_16 = arith.constant 0.000000e+00 : f32
      %19 = vector.broadcast %cst_16 : f32 to vector<1x128xf32>
      %c0_17 = arith.constant 0 : index
      %c0_18 = arith.constant 0 : index
      %20 = vector.load %arg4[%c0_17, %c0_18] : memref<1x128xf32, #tpu.memory_space<vmem>>, vector<1x128xf32>
      tpu.vector_store %arg4[%c0_17, %c0_18], %19 {strides = array<i32>} : memref<1x128xf32, #tpu.memory_space<vmem>>, vector<1x128xf32>,
      %cst_19 = arith.constant 0.000000e+00 : f32
      %21 = vector.broadcast %cst_19 : f32 to vector<1x128xf32>
      %c0_20 = arith.constant 0 : index
      %c0_21 = arith.constant 0 : index
      %22 = vector.load %arg5[%c0_20, %c0_21] : memref<1x128xf32, #tpu.memory_space<vmem>>, vector<1x128xf32>
      tpu.vector_store %arg5[%c0_20, %c0_21], %21 {strides = array<i32>} : memref<1x128xf32, #tpu.memory_space<vmem>>, vector<1x128xf32>,
    } else {
    }
    %c0 = arith.constant 0 : index
    %c0_1 = arith.constant 0 : index
    %3 = vector.load %arg1[%c0, %c0_1] : memref<128x1152xbf16, #tpu.memory_space<vmem>>, vector<128x1152xbf16>
    %c0_2 = arith.constant 0 : index
    %c0_3 = arith.constant 0 : index
    %4 = vector.load %arg2[%c0_2, %c0_3] : memref<1152x128xbf16, #tpu.memory_space<vmem>>, vector<1152x128xbf16>
    %cst = arith.constant dense<0.000000e+00> : vector<128x128xf32>
    %5 = tpu.matmul %3, %4, %cst {dimension_numbers = #tpu.dot_dimension_numbers<[1], [0], [0], [1], [0, 0, 1, 1], [], []>} : vector<128x1152xbf16>, vector<1152x128xbf16>, vector<128x128xf32> -> vector<128x128xf32>
    %c0_4 = arith.constant 0 : index
    %c0_5 = arith.constant 0 : index
    %6 = vector.load %arg4[%c0_4, %c0_5] : memref<1x128xf32, #tpu.memory_space<vmem>>, vector<1x128xf32>
    %cst_6 = arith.constant dense<0.000000e+00> : vector<128xf32>
    %7 = vector.multi_reduction <add>, %5, %cst_6 [0] : vector<128x128xf32> to vector<128xf32>
    %8 = vector.shape_cast %7 : vector<128xf32> to vector<1x128xf32>
    %9 = arith.addf %6, %8 : vector<1x128xf32>
    %c0_7 = arith.constant 0 : index
    %c0_8 = arith.constant 0 : index
    %10 = vector.load %arg4[%c0_7, %c0_8] : memref<1x128xf32, #tpu.memory_space<vmem>>, vector<1x128xf32>
    tpu.vector_store %arg4[%c0_7, %c0_8], %9 {strides = array<i32>} : memref<1x128xf32, #tpu.memory_space<vmem>>, vector<1x128xf32>,
    %c0_9 = arith.constant 0 : index
    %c0_10 = arith.constant 0 : index
    %11 = vector.load %arg5[%c0_9, %c0_10] : memref<1x128xf32, #tpu.memory_space<vmem>>, vector<1x128xf32>
    %12 = arith.mulf %5, %5 : vector<128x128xf32>
    %cst_11 = arith.constant dense<0.000000e+00> : vector<128xf32>
    %13 = vector.multi_reduction <add>, %12, %cst_11 [0] : vector<128x128xf32> to vector<128xf32>
    %14 = vector.shape_cast %13 : vector<128xf32> to vector<1x128xf32>
    %15 = arith.addf %11, %14 : vector<1x128xf32>
    %c0_12 = arith.constant 0 : index
    %c0_13 = arith.constant 0 : index
    %16 = vector.load %arg5[%c0_12, %c0_13] : memref<1x128xf32, #tpu.memory_space<vmem>>, vector<1x128xf32>
    tpu.vector_store %arg5[%c0_12, %c0_13], %15 {strides = array<i32>} : memref<1x128xf32, #tpu.memory_space<vmem>>, vector<1x128xf32>,
    %17 = arith.truncf %5 : vector<128x128xf32> to vector<128x128xbf16>
    %c0_14 = arith.constant 0 : index
    %c0_15 = arith.constant 0 : index
    %18 = vector.load %arg3[%c0_14, %c0_15] : memref<128x128xbf16, #tpu.memory_space<vmem>>, vector<128x128xbf16>
    tpu.vector_store %arg3[%c0_14, %c0_15], %17 {strides = array<i32>} : memref<128x128xbf16, #tpu.memory_space<vmem>>, vector<128x128xbf16>,
    return
  }
  func.func @transform_0(%arg0: i32) -> (i32, i32) {
    %c0_i32 = arith.constant 0 : i32
    %c0_i32_0 = arith.constant 0 : i32
    return %arg0, %c0_i32 : i32, i32
  }
  func.func @transform_1(%arg0: i32) -> (i32, i32) {
    %c0_i32 = arith.constant 0 : i32
    %c0_i32_0 = arith.constant 0 : i32
    %c0_i32_1 = arith.constant 0 : i32
    return %c0_i32, %c0_i32_0 : i32, i32
  }
  func.func @transform_2(%arg0: i32) -> (i32, i32) {
    %c0_i32 = arith.constant 0 : i32
    %c0_i32_0 = arith.constant 0 : i32
    return %arg0, %c0_i32 : i32, i32
  }
  func.func @transform_3(%arg0: i32) -> (i32, i32) {
    %c0_i32 = arith.constant 0 : i32
    %c0_i32_0 = arith.constant 0 : i32
    %c0_i32_1 = arith.constant 0 : i32
    return %c0_i32, %c0_i32_0 : i32, i32
  }
  func.func @transform_4(%arg0: i32) -> (i32, i32) {
    %c0_i32 = arith.constant 0 : i32
    %c0_i32_0 = arith.constant 0 : i32
    %c0_i32_1 = arith.constant 0 : i32
    return %c0_i32, %c0_i32_0 : i32, i32
  }
}

module attributes {stable_mosaic.version = 11 : i64} {
  func.func @_bn_lrelu_res_kernel(%arg0: i32, %arg1: memref<128x128xbf16, #tpu.memory_space<vmem>>, %arg2: memref<1x128xf32, #tpu.memory_space<vmem>>, %arg3: memref<1x128xf32, #tpu.memory_space<vmem>>, %arg4: memref<128x128xbf16, #tpu.memory_space<vmem>>, %arg5: memref<128x128xf32, #tpu.memory_space<vmem>>) attributes {dimension_semantics = [#tpu.dimension_semantics<parallel>], iteration_bounds = array<i64: 1>, scalar_prefetch = 0 : i64, scratch_operands = 0 : i64, tpu.core_type = #tpu.core_type<tc>, window_params = [{transform_indices = @transform_0, window_bounds = array<i64: 128, 128>}, {pipeline_mode = #tpu.pipeline_mode<synchronous>, transform_indices = @transform_1, window_bounds = array<i64: 1, 128>}, {pipeline_mode = #tpu.pipeline_mode<synchronous>, transform_indices = @transform_2, window_bounds = array<i64: 1, 128>}, {transform_indices = @transform_3, window_bounds = array<i64: 128, 128>}, {transform_indices = @transform_4, window_bounds = array<i64: 128, 128>}]} {
    %c0 = arith.constant 0 : index
    %c0_0 = arith.constant 0 : index
    %0 = vector.load %arg1[%c0, %c0_0] : memref<128x128xbf16, #tpu.memory_space<vmem>>, vector<128x128xbf16>
    %1 = arith.extf %0 : vector<128x128xbf16> to vector<128x128xf32>
    %c0_1 = arith.constant 0 : index
    %c0_2 = arith.constant 0 : index
    %2 = vector.load %arg2[%c0_1, %c0_2] : memref<1x128xf32, #tpu.memory_space<vmem>>, vector<1x128xf32>
    %3 = vector.broadcast %2 : vector<1x128xf32> to vector<128x128xf32>
    %4 = arith.mulf %1, %3 : vector<128x128xf32>
    %c0_3 = arith.constant 0 : index
    %c0_4 = arith.constant 0 : index
    %5 = vector.load %arg3[%c0_3, %c0_4] : memref<1x128xf32, #tpu.memory_space<vmem>>, vector<1x128xf32>
    %6 = vector.broadcast %5 : vector<1x128xf32> to vector<128x128xf32>
    %7 = arith.addf %4, %6 : vector<128x128xf32>
    %cst = arith.constant 0.000000e+00 : f32
    %8 = vector.broadcast %cst : f32 to vector<128x128xf32>
    %9 = arith.cmpf ogt, %7, %8 : vector<128x128xf32>
    %cst_5 = arith.constant 2.000000e-01 : f32
    %10 = vector.broadcast %cst_5 : f32 to vector<128x128xf32>
    %11 = arith.mulf %10, %7 : vector<128x128xf32>
    %12 = arith.select %9, %7, %11 : vector<128x128xi1>, vector<128x128xf32>
    %c0_6 = arith.constant 0 : index
    %c0_7 = arith.constant 0 : index
    %13 = vector.load %arg4[%c0_6, %c0_7] : memref<128x128xbf16, #tpu.memory_space<vmem>>, vector<128x128xbf16>
    %14 = arith.extf %13 : vector<128x128xbf16> to vector<128x128xf32>
    %15 = arith.addf %12, %14 : vector<128x128xf32>
    %cst_8 = arith.constant 5.000000e-01 : f32
    %16 = vector.broadcast %cst_8 : f32 to vector<128x128xf32>
    %17 = arith.mulf %15, %16 : vector<128x128xf32>
    %c0_9 = arith.constant 0 : index
    %c0_10 = arith.constant 0 : index
    %18 = vector.load %arg5[%c0_9, %c0_10] : memref<128x128xf32, #tpu.memory_space<vmem>>, vector<128x128xf32>
    tpu.vector_store %arg5[%c0_9, %c0_10], %17 {strides = array<i32>} : memref<128x128xf32, #tpu.memory_space<vmem>>, vector<128x128xf32>,
    return
  }
  func.func @transform_0(%arg0: i32) -> (i32, i32) {
    %c0_i32 = arith.constant 0 : i32
    %c0_i32_0 = arith.constant 0 : i32
    return %arg0, %c0_i32 : i32, i32
  }
  func.func @transform_1(%arg0: i32) -> (i32, i32) {
    %c0_i32 = arith.constant 0 : i32
    %c0_i32_0 = arith.constant 0 : i32
    %c0_i32_1 = arith.constant 0 : i32
    return %c0_i32, %c0_i32_0 : i32, i32
  }
  func.func @transform_2(%arg0: i32) -> (i32, i32) {
    %c0_i32 = arith.constant 0 : i32
    %c0_i32_0 = arith.constant 0 : i32
    %c0_i32_1 = arith.constant 0 : i32
    return %c0_i32, %c0_i32_0 : i32, i32
  }
  func.func @transform_3(%arg0: i32) -> (i32, i32) {
    %c0_i32 = arith.constant 0 : i32
    %c0_i32_0 = arith.constant 0 : i32
    return %arg0, %c0_i32 : i32, i32
  }
  func.func @transform_4(%arg0: i32) -> (i32, i32) {
    %c0_i32 = arith.constant 0 : i32
    %c0_i32_0 = arith.constant 0 : i32
    return %arg0, %c0_i32 : i32, i32
  }
}

</mosaic_0001>

<bundles_post_ra>
// kernel: down_block_comp_forward.9
= control target key start
LH: loop header
LB: loop body
LE: loop exit
PB: predicated region body
PF: predicated region fallthrough
CT: control target
= control target key end

     0   :  { %s455_s0 = inlined_call_operand.vmem [shape: bf16[128,128], index: 0, kind: input, shape index: {}]   ;;  %s456_s1 = inlined_call_operand.vmem [shape: f32[1,128], index: 1, kind: input, shape index: {}]   ;;  %s457_s2 = inlined_call_operand.vmem [shape: f32[1,128], index: 2, kind: input, shape index: {}]   ;;  %s458_s3 = inlined_call_operand.vmem [shape: bf16[128,128], index: 3, kind: output, shape index: {}]  }
   0x1   :  { %v259_v0 = vld [vmem:[%s455_s0] sm:$0xff]   ;;  %v330_v4 = vld [vmem:[%s455_s0 + $0x8] sm:$0xff]   ;;  %v331_v5 = vld [vmem:[%s455_s0 + $0x10] sm:$0xff]  }
   0x2   :  { %v370_v1 = vld [vmem:[%s456_s1] ss:$0 sm:$0xff]  ;;  %v260_v2 = vunpack.c.l.bf16 %v259_v0  ;;  %v261_v3 = vunpack.c.h.bf16 %v259_v0  ;;  %v332_v6 = vld [vmem:[%s455_s0 + $0x18] sm:$0xff]   ;;  %v264_v8 = vunpack.c.l.bf16 %v330_v4  ;;  %v265_v9 = vunpack.c.h.bf16 %v330_v4  ;;  %v334_v35 = vld [vmem:[%s455_s0 + $0x28] sm:$0xff]  }
   0x3   :  { %v384_v7 = vld [vmem:[%s457_s2] ss:$0 sm:$0xff]  ;;  %v268_v10 = vunpack.c.l.bf16 %v331_v5  ;;  %v269_v11 = vunpack.c.h.bf16 %v331_v5  ;;  %v272_v14 = vunpack.c.l.bf16 %v332_v6  ;;  %v273_v15 = vunpack.c.h.bf16 %v332_v6  ;;  %v335_v48 = vld [vmem:[%s455_s0 + $0x30] sm:$0xff]   ;;  %v336_v4 = vld [vmem:[%s455_s0 + $0x38] sm:$0xff]  }
   0x4   :  { %v53_v12 = vmul.f32 %v260_v2, %v370_v1  ;;  %v54_v13 = vmul.f32 %v261_v3, %v370_v1  ;;  %v55_v16 = vmul.f32 %v264_v8, %v370_v1  ;;  %v56_v17 = vmul.f32 %v265_v9, %v370_v1  ;;  %v333_v34 = vld [vmem:[%s455_s0 + $0x20] sm:$0xff]  }
   0x5   :  { %v57_v18 = vmul.f32 %v268_v10, %v370_v1  ;;  %v58_v19 = vmul.f32 %v269_v11, %v370_v1  ;;  %v59_v22 = vmul.f32 %v272_v14, %v370_v1  ;;  %v60_v23 = vmul.f32 %v273_v15, %v370_v1 }
   0x6   :  { %v76_v20 = vadd.f32 %v384_v7, %v53_v12  ;;  %v77_v21 = vadd.f32 %v384_v7, %v54_v13  ;;  %v78_v24 = vadd.f32 %v384_v7, %v55_v16  ;;  %v79_v25 = vadd.f32 %v384_v7, %v56_v17 }
   0x7   :  { %v80_v26 = vadd.f32 %v384_v7, %v57_v18  ;;  %v81_v27 = vadd.f32 %v384_v7, %v58_v19  ;;  %v82_v42 = vadd.f32 %v384_v7, %v59_v22  ;;  %v83_v43 = vadd.f32 %v384_v7, %v60_v23 }
   0x8   :  { %vm92_vm0 = vcmp.gt.f32.partialorder %v76_v20, 0.0  ;;  %vm93_vm1 = vcmp.gt.f32.partialorder %v77_v21, 0.0  ;;  %v108_v28 = vmul.f32 0.2, %v76_v20  ;;  %v109_v29 = vmul.f32 0.2, %v77_v21 }
   0x9   :  { %vm94_vm2 = vcmp.gt.f32.partialorder %v78_v24, 0.0  ;;  %vm95_vm3 = vcmp.gt.f32.partialorder %v79_v25, 0.0  ;;  %v110_v30 = vmul.f32 0.2, %v78_v24  ;;  %v111_v31 = vmul.f32 0.2, %v79_v25 }
   0xa   :  { %v124_v32 = vsel %vm92_vm0, %v76_v20, %v108_v28  ;;  %v125_v33 = vsel %vm93_vm1, %v77_v21, %v109_v29  ;;  %vm96_vm4 = vcmp.gt.f32.partialorder %v80_v26, 0.0  ;;  %vm97_vm5 = vcmp.gt.f32.partialorder %v81_v27, 0.0 }
   0xb   :  { %v293_v36 = vpack.c.bf16 %v125_v33, %v124_v32  ;;  %v126_v37 = vsel %vm94_vm2, %v78_v24, %v110_v30  ;;  %v127_v38 = vsel %vm95_vm3, %v79_v25, %v111_v31  ;;  %v112_v39 = vmul.f32 0.2, %v80_v26 }
   0xc   :  { %v298_v40 = vpack.c.bf16 %v127_v38, %v126_v37  ;;  %v113_v41 = vmul.f32 0.2, %v81_v27  ;;  %v276_v45 = vunpack.c.l.bf16 %v333_v34  ;;  %v277_v46 = vunpack.c.h.bf16 %v333_v34 }
   0xd   :  { %294 = vst [vmem:[%s458_s3] sm:$0xff] %v293_v36   ;;  %v128_v44 = vsel %vm96_vm4, %v80_v26, %v112_v39  ;;  %v280_v47 = vunpack.c.l.bf16 %v334_v35  ;;  %vm98_vm6 = vcmp.gt.f32.partialorder %v82_v42, 0.0  ;;  %vm99_vm7 = vcmp.gt.f32.partialorder %v83_v43, 0.0 }
   0xe   :  { %337 = vst [vmem:[%s458_s3 + $0x8] sm:$0xff] %v298_v40   ;;  %v129_v49 = vsel %vm97_vm5, %v81_v27, %v113_v41  ;;  %v114_v50 = vmul.f32 0.2, %v82_v42  ;;  %v115_v52 = vmul.f32 0.2, %v83_v43  ;;  %v61_v53 = vmul.f32 %v276_v45, %v370_v1 }
   0xf   :  { %v303_v51 = vpack.c.bf16 %v129_v49, %v128_v44  ;;  %v62_v54 = vmul.f32 %v277_v46, %v370_v1  ;;  %v281_v56 = vunpack.c.h.bf16 %v334_v35  ;;  %v63_v57 = vmul.f32 %v280_v47, %v370_v1 }
  0x10   :  { %v130_v55 = vsel %vm98_vm6, %v82_v42, %v114_v50  ;;  %v284_v58 = vunpack.c.l.bf16 %v335_v48  ;;  %v131_v59 = vsel %vm99_vm7, %v83_v43, %v115_v52  ;;  %v84_v60 = vadd.f32 %v384_v7, %v61_v53 }
  0x11   :  { %338 = vst [vmem:[%s458_s3 + $0x10] sm:$0xff] %v303_v51   ;;  %v85_v61 = vadd.f32 %v384_v7, %v62_v54  ;;  %v285_v62 = vunpack.c.h.bf16 %v335_v48  ;;  %v308_v63 = vpack.c.bf16 %v131_v59, %v130_v55  ;;  %v64_v0 = vmul.f32 %v281_v56, %v370_v1 }
  0x12   :  { %v86_v2 = vadd.f32 %v384_v7, %v63_v57  ;;  %v65_v3 = vmul.f32 %v284_v58, %v370_v1  ;;  %vm100_vm8 = vcmp.gt.f32.partialorder %v84_v60, 0.0  ;;  %v116_v5 = vmul.f32 0.2, %v84_v60 }
  0x13   :  { %vm101_vm9 = vcmp.gt.f32.partialorder %v85_v61, 0.0  ;;  %v117_v6 = vmul.f32 0.2, %v85_v61  ;;  %339 = vst [vmem:[%s458_s3 + $0x18] sm:$0xff] %v308_v63   ;;  %v87_v8 = vadd.f32 %v384_v7, %v64_v0  ;;  %v66_v10 = vmul.f32 %v285_v62, %v370_v1 }
  0x14   :  { %vm102_vm10 = vcmp.gt.f32.partialorder %v86_v2, 0.0  ;;  %v118_v9 = vmul.f32 0.2, %v86_v2  ;;  %v132_v11 = vsel %vm100_vm8, %v84_v60, %v116_v5  ;;  %v88_v13 = vadd.f32 %v384_v7, %v65_v3 }
  0x15   :  { %v133_v12 = vsel %vm101_vm9, %v85_v61, %v117_v6  ;;  %v288_v14 = vunpack.c.l.bf16 %v336_v4  ;;  %vm103_vm11 = vcmp.gt.f32.partialorder %v87_v8, 0.0  ;;  %v119_v16 = vmul.f32 0.2, %v87_v8 }
  0x16   :  { %v313_v15 = vpack.c.bf16 %v133_v12, %v132_v11  ;;  %v134_v17 = vsel %vm102_vm10, %v86_v2, %v118_v9  ;;  %v89_v18 = vadd.f32 %v384_v7, %v66_v10  ;;  %vm104_vm12 = vcmp.gt.f32.partialorder %v88_v13, 0.0 }
  0x17   :  { %v120_v19 = vmul.f32 0.2, %v88_v13  ;;  %v289_v20 = vunpack.c.h.bf16 %v336_v4  ;;  %v135_v21 = vsel %vm103_vm11, %v87_v8, %v119_v16  ;;  %v67_v22 = vmul.f32 %v288_v14, %v370_v1 }
  0x18   :  { %340 = vst [vmem:[%s458_s3 + $0x20] sm:$0xff] %v313_v15   ;;  %v318_v23 = vpack.c.bf16 %v135_v21, %v134_v17  ;;  %vm105_vm13 = vcmp.gt.f32.partialorder %v89_v18, 0.0  ;;  %v121_v24 = vmul.f32 0.2, %v89_v18 }
  0x19   :  { %v136_v25 = vsel %vm104_vm12, %v88_v13, %v120_v19  ;;  %v68_v26 = vmul.f32 %v289_v20, %v370_v1  ;;  %v90_v27 = vadd.f32 %v384_v7, %v67_v22 }
  0x1a   :  { %341 = vst [vmem:[%s458_s3 + $0x28] sm:$0xff] %v318_v23   ;;  %v137_v28 = vsel %vm105_vm13, %v89_v18, %v121_v24 }
  0x1b   :  { %v323_v29 = vpack.c.bf16 %v137_v28, %v136_v25  ;;  %v91_v30 = vadd.f32 %v384_v7, %v68_v26  ;;  %vm106_vm14 = vcmp.gt.f32.partialorder %v90_v27, 0.0  ;;  %v122_v31 = vmul.f32 0.2, %v90_v27 }
  0x1d   :  { %342 = vst [vmem:[%s458_s3 + $0x30] sm:$0xff] %v323_v29   ;;  %vm107_vm15 = vcmp.gt.f32.partialorder %v91_v30, 0.0  ;;  %v123_v32 = vmul.f32 0.2, %v91_v30  ;;  %v138_v33 = vsel %vm106_vm14, %v90_v27, %v122_v31 }
  0x1f   :  { %v139_v1 = vsel %vm107_vm15, %v91_v30, %v123_v32 }
  0x20   :  { %v328_v34 = vpack.c.bf16 %v139_v1, %v138_v33 }
  0x22   :  { %343 = vst [vmem:[%s458_s3 + $0x38] sm:$0xff] %v328_v34  }

// kernel: down_block_comp_forward.8
= control target key start
LH: loop header
LB: loop body
LE: loop exit
PB: predicated region body
PF: predicated region fallthrough
CT: control target
= control target key end

     0   :  { %v578_v16 = vmov 0.0   ;;  %s694_s1 = inlined_call_operand.vmem [shape: bf16[128,128], index: 1, kind: input, shape index: {}]   ;;  %s695_s0 = inlined_call_operand.vmem [shape: bf16[128,128], index: 0, kind: input, shape index: {}]   ;;  %s696_s3 = inlined_call_operand.vmem [shape: f32[1,128], index: 3, kind: output, shape index: {1}]   ;;  %s697_s4 = inlined_call_operand.vmem [shape: f32[1,128], index: 4, kind: output, shape index: {2}]   ;;  %s698_s2 = inlined_call_operand.vmem [shape: bf16[128,128], index: 2, kind: output, shape index: {0}]  }
   0x1   :  { %v562_v0 = vld [vmem:[%s694_s1] sm:$0xff]   ;;  %v563_v1 = vld [vmem:[%s694_s1 + $0x8] sm:$0xff]   ;;  %v564_v2 = vld [vmem:[%s694_s1 + $0x10] sm:$0xff]   ;;  %19 = vst [vmem:[%s696_s3] sm:$0x1] %v578_v16 }
   0x2   :  { %513 = vmatprep.subr.bf16.mxu0 %v562_v0  ;;  %545 = vmatprep.subr.bf16.mxu1 %v562_v0  ;;  %v565_v3 = vld [vmem:[%s694_s1 + $0x18] sm:$0xff]   ;;  %v570_v4 = vld [vmem:[%s695_s0] sm:$0xff]   ;;  %v567_v7 = vld [vmem:[%s694_s1 + $0x28] sm:$0xff]   ;;  %20 = vst [vmem:[%s697_s4] sm:$0x1] %v578_v16 }
   0x3   :  { %514 = vmatpush3.bf16.msra.mxu0 %v562_v0  ;;  %553 = vmatpush3.bf16.msra.mxu1 %v562_v0  ;;  %v566_v5 = vld [vmem:[%s694_s1 + $0x20] sm:$0xff]   ;;  %v568_v8 = vld [vmem:[%s694_s1 + $0x30] sm:$0xff]   ;;  %v569_v9 = vld [vmem:[%s694_s1 + $0x38] sm:$0xff]  }
   0x4   :  { %515 = vmatprep.subr.bf16.mxu0 %v563_v1  ;;  %546 = vmatprep.subr.bf16.mxu1 %v563_v1  ;;  %v574_v6 = vld [vmem:[%s695_s0 + $0x20] sm:$0xff]   ;;  %v571_v10 = vld [vmem:[%s695_s0 + $0x8] sm:$0xff]   ;;  %v572_v12 = vld [vmem:[%s695_s0 + $0x10] sm:$0xff]  }
   0x5   :  { %529 = vmatprep.mubr.bf16.mxu0 %v570_v4  ;;  %537 = vmatprep.mubr.bf16.mxu1 %v574_v6  ;;  %v575_v11 = vld [vmem:[%s695_s0 + $0x28] sm:$0xff]   ;;  %v576_v13 = vld [vmem:[%s695_s0 + $0x30] sm:$0xff]   ;;  %v573_v14 = vld [vmem:[%s695_s0 + $0x18] sm:$0xff]  }
   0x6   :  { %v577_v15 = vld [vmem:[%s695_s0 + $0x38] sm:$0xff]  }
   0x7   :  { %516 = vmatpush3.bf16.msra.mxu0 %v563_v1  ;;  %554 = vmatpush3.bf16.msra.mxu1 %v563_v1 }
   0x8   :  { %517 = vmatprep.subr.bf16.mxu0 %v564_v2  ;;  %547 = vmatprep.subr.bf16.mxu1 %v564_v2 }
   0xb   :  { %518 = vmatpush3.bf16.msra.mxu0 %v564_v2  ;;  %555 = vmatpush3.bf16.msra.mxu1 %v564_v2 }
   0xc   :  { %519 = vmatprep.subr.bf16.mxu0 %v565_v3  ;;  %548 = vmatprep.subr.bf16.mxu1 %v565_v3 }
   0xf   :  { %520 = vmatpush3.bf16.msra.mxu0 %v565_v3  ;;  %556 = vmatpush3.bf16.msra.mxu1 %v565_v3 }
  0x10   :  { %521 = vmatprep.subr.bf16.mxu0 %v566_v5  ;;  %549 = vmatprep.subr.bf16.mxu1 %v566_v5 }
  0x13   :  { %522 = vmatpush3.bf16.msra.mxu0 %v566_v5  ;;  %557 = vmatpush3.bf16.msra.mxu1 %v566_v5 }
  0x14   :  { %523 = vmatprep.subr.bf16.mxu0 %v567_v7  ;;  %550 = vmatprep.subr.bf16.mxu1 %v567_v7 }
  0x17   :  { %524 = vmatpush3.bf16.msra.mxu0 %v567_v7  ;;  %558 = vmatpush3.bf16.msra.mxu1 %v567_v7 }
  0x18   :  { %525 = vmatprep.subr.bf16.mxu0 %v568_v8  ;;  %551 = vmatprep.subr.bf16.mxu1 %v568_v8 }
  0x1b   :  { %526 = vmatpush3.bf16.msra.mxu0 %v568_v8  ;;  %559 = vmatpush3.bf16.msra.mxu1 %v568_v8 }
  0x1c   :  { %527 = vmatprep.subr.bf16.mxu0 %v569_v9  ;;  %552 = vmatprep.subr.bf16.mxu1 %v569_v9 }
  0x1f   :  { %528 = vmatpush3.bf16.msra.mxu0 %v569_v9  ;;  %560 = vmatpush3.bf16.msra.mxu1 %v569_v9 }
  0x22   :  { %530 = vmatmul.mubr.bf16.vlgmr.msra.gmra.mrb[0].mxu0 %v571_v10  ;;  %538 = vmatmul.mubr.bf16.vlgmr.msra.gmra.mrb[0].mxu1 %v575_v11 }
  0x23   :  { %533 = vmatprep.mubr.bf16.mxu0 %v572_v12  ;;  %541 = vmatprep.mubr.bf16.mxu1 %v576_v13 }
  0x2a   :  { %534 = vmatmul.mubr.bf16.gmra.mrb[4].mxu0 %v573_v14  ;;  %542 = vmatmul.mubr.bf16.gmra.mrb[4].mxu1 %v577_v15 }
  0xf5   :  { %v531_v17 = vpop.f32.mrb[0].mxu0  ;;  %v539_v18 = vpop.f32.mrb[0].mxu1 }
  0xf6   :  { %v183_v19 = vpop.f32.mrb[1].mxu0  ;;  %v215_v20 = vpop.f32.mrb[1].mxu1  ;;  %v273_v32 = vmul.f32 %v531_v17, %v531_v17  ;;  %v281_v4 = vmul.f32 %v539_v18, %v539_v18 }
  0xf7   :  { %v532_v21 = vpop.f32.mrb[2].mxu0  ;;  %v540_v22 = vpop.f32.mrb[2].mxu1  ;;  %v271_v27 = vmul.f32 %v183_v19, %v183_v19  ;;  %v279_v62 = vmul.f32 %v215_v20, %v215_v20 }
  0xf8   :  { %v458_v23 = vpack.c.bf16 %v532_v21, %v531_v17  ;;  %v186_v24 = vpop.f32.mrb[3].mxu0  ;;  %v478_v25 = vpack.c.bf16 %v540_v22, %v539_v18  ;;  %v218_v26 = vpop.f32.mrb[3].mxu1  ;;  %v274_v35 = vmul.f32 %v532_v21, %v532_v21  ;;  %v282_v7 = vmul.f32 %v540_v22, %v540_v22 }
  0xf9   :  { %v247_v28 = vadd.f32 %v186_v24, %v183_v19  ;;  %v272_v29 = vmul.f32 %v186_v24, %v186_v24  ;;  %v453_v30 = vpack.c.bf16 %v186_v24, %v183_v19  ;;  %v473_v31 = vpack.c.bf16 %v218_v26, %v215_v20 }
  0xfa   :  { %490 = vst [vmem:[%s698_s2 + $0x8] sm:$0xff] %v458_v23   ;;  %494 = vst [vmem:[%s698_s2 + $0x28] sm:$0xff] %v478_v25   ;;  %v280_v3 = vmul.f32 %v218_v26, %v218_v26 }
  0xfb   :  { %v248_v33 = vadd.f32 %v531_v17, %v247_v28  ;;  %v287_v34 = vadd.f32 %v272_v29, %v271_v27  ;;  %454 = vst [vmem:[%s698_s2] sm:$0xff] %v453_v30   ;;  %493 = vst [vmem:[%s698_s2 + $0x20] sm:$0xff] %v473_v31  }
  0xfd   :  { %v288_v36 = vadd.f32 %v287_v34, %v273_v32  ;;  %v535_v37 = vpop.f32.mrb[4].mxu0  ;;  %v249_v38 = vadd.f32 %v532_v21, %v248_v33  ;;  %v543_v39 = vpop.f32.mrb[4].mxu1  ;;  %v246_v32 = vld [vmem:[%s696_s3] sm:$0x1] }
  0xfe   :  { %v199_v40 = vpop.f32.mrb[5].mxu0  ;;  %v231_v41 = vpop.f32.mrb[5].mxu1  ;;  %v277_v56 = vmul.f32 %v535_v37, %v535_v37  ;;  %v285_v16 = vmul.f32 %v543_v39, %v543_v39 }
  0xff   :  { %v250_v42 = vadd.f32 %v249_v38, %v199_v40  ;;  %v275_v43 = vmul.f32 %v199_v40, %v199_v40  ;;  %v289_v44 = vadd.f32 %v288_v36, %v274_v35  ;;  %v536_v45 = vpop.f32.mrb[6].mxu0  ;;  %v544_v46 = vpop.f32.mrb[6].mxu1  ;;  %v283_v10 = vmul.f32 %v231_v41, %v231_v41  ;;  %v270_v35 = vld [vmem:[%s697_s4] sm:$0x1] }
 0x100   :  { %v468_v47 = vpack.c.bf16 %v536_v45, %v535_v37  ;;  %v202_v48 = vpop.f32.mrb[7].mxu0  ;;  %v488_v49 = vpack.c.bf16 %v544_v46, %v543_v39  ;;  %v234_v50 = vpop.f32.mrb[7].mxu1  ;;  %v278_v59 = vmul.f32 %v536_v45, %v536_v45 }
 0x101   :  { %v290_v51 = vadd.f32 %v289_v44, %v275_v43  ;;  %v251_v52 = vadd.f32 %v250_v42, %v202_v48  ;;  %v276_v53 = vmul.f32 %v202_v48, %v202_v48  ;;  %v463_v54 = vpack.c.bf16 %v202_v48, %v199_v40 }
 0x102   :  { %492 = vst [vmem:[%s698_s2 + $0x18] sm:$0xff] %v468_v47   ;;  %496 = vst [vmem:[%s698_s2 + $0x38] sm:$0xff] %v488_v49   ;;  %v483_v55 = vpack.c.bf16 %v234_v50, %v231_v41  ;;  %v284_v15 = vmul.f32 %v234_v50, %v234_v50 }
 0x103   :  { %v252_v57 = vadd.f32 %v535_v37, %v251_v52  ;;  %v291_v58 = vadd.f32 %v290_v51, %v276_v53  ;;  %491 = vst [vmem:[%s698_s2 + $0x10] sm:$0xff] %v463_v54  }
 0x104   :  { %495 = vst [vmem:[%s698_s2 + $0x30] sm:$0xff] %v483_v55  }
 0x105   :  { %v292_v60 = vadd.f32 %v291_v58, %v277_v56  ;;  %v253_v61 = vadd.f32 %v536_v45, %v252_v57 }
 0x107   :  { %v254_v63 = vadd.f32 %v253_v61, %v215_v20  ;;  %v293_v0 = vadd.f32 %v292_v60, %v278_v59  ;;  %v286_v20 = vmul.f32 %v544_v46, %v544_v46 }
 0x109   :  { %v294_v1 = vadd.f32 %v293_v0, %v279_v62  ;;  %v255_v2 = vadd.f32 %v254_v63, %v218_v26 }
 0x10b   :  { %v256_v5 = vadd.f32 %v539_v18, %v255_v2  ;;  %v295_v6 = vadd.f32 %v294_v1, %v280_v3 }
 0x10d   :  { %v296_v8 = vadd.f32 %v295_v6, %v281_v4  ;;  %v257_v9 = vadd.f32 %v540_v22, %v256_v5 }
 0x10f   :  { %v258_v11 = vadd.f32 %v257_v9, %v231_v41  ;;  %v297_v12 = vadd.f32 %v296_v8, %v282_v7 }
 0x111   :  { %v298_v13 = vadd.f32 %v297_v12, %v283_v10  ;;  %v259_v14 = vadd.f32 %v258_v11, %v234_v50 }
 0x113   :  { %v260_v17 = vadd.f32 %v543_v39, %v259_v14  ;;  %v299_v19 = vadd.f32 %v298_v13, %v284_v15 }
 0x115   :  { %v261_v21 = vadd.f32 %v544_v46, %v260_v17  ;;  %v300_v23 = vadd.f32 %v299_v19, %v285_v16 }
 0x117   :  { %v262_v24 = vrot.slane %v261_v21, 4  ;;  %v301_v25 = vadd.f32 %v300_v23, %v286_v20 }
 0x119   :  { %v263_v26 = vadd.f32 %v262_v24, %v261_v21  ;;  %v302_v18 = vrot.slane %v301_v25, 4 }
 0x11b   :  { %v264_v27 = vrot.slane %v263_v26, 2  ;;  %v303_v28 = vadd.f32 %v302_v18, %v301_v25 }
 0x11d   :  { %v265_v29 = vadd.f32 %v264_v27, %v263_v26  ;;  %v304_v22 = vrot.slane %v303_v28, 2 }
 0x11f   :  { %v266_v30 = vrot.slane %v265_v29, 1  ;;  %v305_v31 = vadd.f32 %v304_v22, %v303_v28 }
 0x121   :  { %v267_v33 = vadd.f32 %v266_v30, %v265_v29  ;;  %v306_v34 = vrot.slane %v305_v31, 1 }
 0x123   :  { %v268_v36 = vadd.f32 %v267_v33, %v246_v32  ;;  %v307_v37 = vadd.f32 %v306_v34, %v305_v31 }
 0x125   :  { %269 = vst [vmem:[%s696_s3] sm:$0x1] %v268_v36  ;;  %v308_v38 = vadd.f32 %v307_v37, %v270_v35 }
 0x127   :  { %309 = vst [vmem:[%s697_s4] sm:$0x1] %v308_v38 }

// kernel: down_block_comp_forward.11
= control target key start
LH: loop header
LB: loop body
LE: loop exit
PB: predicated region body
PF: predicated region fallthrough
CT: control target
= control target key end

     0   :  { %s474_s0 = inlined_call_operand.vmem [shape: bf16[128,128], index: 0, kind: input, shape index: {}]   ;;  %s475_s1 = inlined_call_operand.vmem [shape: f32[1,128], index: 1, kind: input, shape index: {}]   ;;  %s476_s2 = inlined_call_operand.vmem [shape: f32[1,128], index: 2, kind: input, shape index: {}]   ;;  %s477_s3 = inlined_call_operand.vmem [shape: bf16[128,128], index: 3, kind: input, shape index: {}]   ;;  %s478_s4 = inlined_call_operand.vmem [shape: f32[128,128], index: 4, kind: output, shape index: {}]  }
   0x1   :  { %v230_v0 = vld [vmem:[%s474_s0] sm:$0xff]   ;;  %v293_v5 = vld [vmem:[%s474_s0 + $0x8] sm:$0xff]   ;;  %v294_v12 = vld [vmem:[%s474_s0 + $0x10] sm:$0xff]  }
   0x2   :  { %v338_v1 = vld [vmem:[%s475_s1] ss:$0 sm:$0xff]  ;;  %v231_v2 = vunpack.c.l.bf16 %v230_v0  ;;  %v232_v4 = vunpack.c.h.bf16 %v230_v0  ;;  %v300_v6 = vld [vmem:[%s477_s3 + $0x8] sm:$0xff]   ;;  %v235_v10 = vunpack.c.l.bf16 %v293_v5  ;;  %v301_v13 = vld [vmem:[%s477_s3 + $0x10] sm:$0xff]   ;;  %v236_v16 = vunpack.c.h.bf16 %v293_v5 }
   0x3   :  { %v262_v3 = vld [vmem:[%s477_s3] sm:$0xff]   ;;  %v267_v11 = vunpack.c.l.bf16 %v300_v6  ;;  %v268_v17 = vunpack.c.h.bf16 %v300_v6  ;;  %v365_v18 = vld [vmem:[%s474_s0 + $0x18] sm:$0xff]   ;;  %v239_v20 = vunpack.c.l.bf16 %v294_v12  ;;  %v271_v21 = vunpack.c.l.bf16 %v301_v13 }
   0x4   :  { %v352_v7 = vld [vmem:[%s476_s2] ss:$0 sm:$0xff]  ;;  %v263_v8 = vunpack.c.l.bf16 %v262_v3  ;;  %v264_v9 = vunpack.c.h.bf16 %v262_v3  ;;  %v56_v14 = vmul.f32 %v231_v2, %v338_v1  ;;  %v57_v15 = vmul.f32 %v232_v4, %v338_v1  ;;  %v302_v46 = vld [vmem:[%s477_s3 + $0x18] sm:$0xff]   ;;  %v297_v3 = vld [vmem:[%s474_s0 + $0x28] sm:$0xff]  }
   0x5   :  { %v58_v19 = vmul.f32 %v235_v10, %v338_v1  ;;  %v240_v22 = vunpack.c.h.bf16 %v294_v12  ;;  %v59_v25 = vmul.f32 %v236_v16, %v338_v1  ;;  %v272_v26 = vunpack.c.h.bf16 %v301_v13  ;;  %v296_v54 = vld [vmem:[%s474_s0 + $0x20] sm:$0xff]  }
   0x6   :  { %v79_v23 = vadd.f32 %v352_v7, %v56_v14  ;;  %v80_v24 = vadd.f32 %v352_v7, %v57_v15  ;;  %v60_v28 = vmul.f32 %v239_v20, %v338_v1  ;;  %v243_v30 = vunpack.c.l.bf16 %v365_v18  ;;  %v303_v62 = vld [vmem:[%s477_s3 + $0x20] sm:$0xff]  }
   0x7   :  { %v81_v27 = vadd.f32 %v352_v7, %v58_v19  ;;  %v61_v29 = vmul.f32 %v240_v22, %v338_v1  ;;  %v82_v34 = vadd.f32 %v352_v7, %v59_v25  ;;  %v275_v58 = vunpack.c.l.bf16 %v302_v46 }
   0x8   :  { %vm95_vm0 = vcmp.gt.f32.partialorder %v79_v23, 0.0  ;;  %v111_v31 = vmul.f32 0.2, %v79_v23  ;;  %vm96_vm1 = vcmp.gt.f32.partialorder %v80_v24, 0.0  ;;  %v112_v32 = vmul.f32 0.2, %v80_v24 }
   0x9   :  { %vm97_vm2 = vcmp.gt.f32.partialorder %v81_v27, 0.0  ;;  %v113_v33 = vmul.f32 0.2, %v81_v27  ;;  %v83_v35 = vadd.f32 %v352_v7, %v60_v28  ;;  %v84_v38 = vadd.f32 %v352_v7, %v61_v29 }
   0xa   :  { %v127_v36 = vsel %vm95_vm0, %v79_v23, %v111_v31  ;;  %v128_v37 = vsel %vm96_vm1, %v80_v24, %v112_v32  ;;  %v62_v39 = vmul.f32 %v243_v30, %v338_v1  ;;  %vm98_vm3 = vcmp.gt.f32.partialorder %v82_v34, 0.0 }
   0xb   :  { %v175_v40 = vadd.f32 %v263_v8, %v127_v36  ;;  %v176_v41 = vadd.f32 %v264_v9, %v128_v37  ;;  %v129_v42 = vsel %vm97_vm2, %v81_v27, %v113_v33  ;;  %v114_v44 = vmul.f32 0.2, %v82_v34  ;;  %v304_v9 = vld [vmem:[%s477_s3 + $0x28] sm:$0xff]  }
   0xc   :  { %v177_v43 = vadd.f32 %v267_v11, %v129_v42  ;;  %vm99_vm4 = vcmp.gt.f32.partialorder %v83_v35, 0.0  ;;  %v115_v45 = vmul.f32 0.2, %v83_v35  ;;  %vm100_vm5 = vcmp.gt.f32.partialorder %v84_v38, 0.0 }
   0xd   :  { %v191_v47 = vmul.f32 0.5, %v175_v40  ;;  %v192_v48 = vmul.f32 0.5, %v176_v41  ;;  %v116_v49 = vmul.f32 0.2, %v84_v38  ;;  %v130_v51 = vsel %vm98_vm3, %v82_v34, %v114_v44 }
   0xe   :  { %v193_v50 = vmul.f32 0.5, %v177_v43  ;;  %v131_v52 = vsel %vm99_vm4, %v83_v35, %v115_v45  ;;  %v85_v53 = vadd.f32 %v352_v7, %v62_v39  ;;  %v178_v55 = vadd.f32 %v268_v17, %v130_v51  ;;  %v299_v43 = vld [vmem:[%s474_s0 + $0x38] sm:$0xff]  }
   0xf   :  { %207 = vst [vmem:[%s478_s4] sm:$0xff] %v191_v47  ;;  %208 = vst [vmem:[%s478_s4 + $0x8] sm:$0xff] %v192_v48  ;;  %v179_v56 = vadd.f32 %v271_v21, %v131_v52  ;;  %v132_v57 = vsel %vm100_vm5, %v84_v38, %v116_v49  ;;  %v244_v61 = vunpack.c.h.bf16 %v365_v18  ;;  %v247_v2 = vunpack.c.l.bf16 %v296_v54  ;;  %v298_v18 = vld [vmem:[%s474_s0 + $0x30] sm:$0xff]  }
  0x10   :  { %209 = vst [vmem:[%s478_s4 + $0x10] sm:$0xff] %v193_v50  ;;  %v180_v59 = vadd.f32 %v272_v26, %v132_v57  ;;  %vm101_vm6 = vcmp.gt.f32.partialorder %v85_v53, 0.0  ;;  %v117_v60 = vmul.f32 0.2, %v85_v53  ;;  %v194_v63 = vmul.f32 0.5, %v178_v55  ;;  %v305_v38 = vld [vmem:[%s477_s3 + $0x30] sm:$0xff]  }
  0x11   :  { %v195_v0 = vmul.f32 0.5, %v179_v56  ;;  %v63_v6 = vmul.f32 %v244_v61, %v338_v1  ;;  %v276_v8 = vunpack.c.h.bf16 %v302_v46  ;;  %v64_v11 = vmul.f32 %v247_v2, %v338_v1  ;;  %v306_v61 = vld [vmem:[%s477_s3 + $0x38] sm:$0xff]  }
  0x12   :  { %v196_v4 = vmul.f32 0.5, %v180_v59  ;;  %v133_v5 = vsel %vm101_vm6, %v85_v53, %v117_v60  ;;  %210 = vst [vmem:[%s478_s4 + $0x18] sm:$0xff] %v194_v63  ;;  %v279_v12 = vunpack.c.l.bf16 %v303_v62  ;;  %v248_v13 = vunpack.c.h.bf16 %v296_v54 }
  0x13   :  { %211 = vst [vmem:[%s478_s4 + $0x20] sm:$0xff] %v195_v0  ;;  %v181_v10 = vadd.f32 %v275_v58, %v133_v5  ;;  %v86_v14 = vadd.f32 %v352_v7, %v63_v6  ;;  %v280_v15 = vunpack.c.h.bf16 %v303_v62  ;;  %v251_v16 = vunpack.c.l.bf16 %v297_v3 }
  0x14   :  { %212 = vst [vmem:[%s478_s4 + $0x28] sm:$0xff] %v196_v4  ;;  %v252_v17 = vunpack.c.h.bf16 %v297_v3  ;;  %v87_v20 = vadd.f32 %v352_v7, %v64_v11  ;;  %v65_v21 = vmul.f32 %v248_v13, %v338_v1  ;;  %v283_v22 = vunpack.c.l.bf16 %v304_v9 }
  0x15   :  { %v197_v19 = vmul.f32 0.5, %v181_v10  ;;  %vm102_vm7 = vcmp.gt.f32.partialorder %v86_v14, 0.0  ;;  %v118_v23 = vmul.f32 0.2, %v86_v14  ;;  %v66_v24 = vmul.f32 %v251_v16, %v338_v1 }
  0x16   :  { %v67_v25 = vmul.f32 %v252_v17, %v338_v1  ;;  %vm103_vm8 = vcmp.gt.f32.partialorder %v87_v20, 0.0  ;;  %v119_v26 = vmul.f32 0.2, %v87_v20  ;;  %v88_v27 = vadd.f32 %v352_v7, %v65_v21 }
  0x17   :  { %213 = vst [vmem:[%s478_s4 + $0x30] sm:$0xff] %v197_v19  ;;  %v255_v28 = vunpack.c.l.bf16 %v298_v18  ;;  %v134_v29 = vsel %vm102_vm7, %v86_v14, %v118_v23  ;;  %v89_v30 = vadd.f32 %v352_v7, %v66_v24  ;;  %v284_v32 = vunpack.c.h.bf16 %v304_v9 }
  0x18   :  { %v90_v31 = vadd.f32 %v352_v7, %v67_v25  ;;  %v182_v33 = vadd.f32 %v276_v8, %v134_v29  ;;  %v135_v34 = vsel %vm103_vm8, %v87_v20, %v119_v26  ;;  %vm104_vm9 = vcmp.gt.f32.partialorder %v88_v27, 0.0 }
  0x19   :  { %v120_v35 = vmul.f32 0.2, %v88_v27  ;;  %v183_v36 = vadd.f32 %v279_v12, %v135_v34  ;;  %vm105_vm10 = vcmp.gt.f32.partialorder %v89_v30, 0.0  ;;  %v121_v37 = vmul.f32 0.2, %v89_v30 }
  0x1a   :  { %vm106_vm11 = vcmp.gt.f32.partialorder %v90_v31, 0.0  ;;  %v198_v39 = vmul.f32 0.5, %v182_v33  ;;  %v122_v41 = vmul.f32 0.2, %v90_v31  ;;  %v68_v42 = vmul.f32 %v255_v28, %v338_v1 }
  0x1b   :  { %v136_v40 = vsel %vm104_vm9, %v88_v27, %v120_v35  ;;  %v199_v44 = vmul.f32 0.5, %v183_v36  ;;  %v137_v46 = vsel %vm105_vm10, %v89_v30, %v121_v37  ;;  %v256_v47 = vunpack.c.h.bf16 %v298_v18 }
  0x1c   :  { %v184_v45 = vadd.f32 %v280_v15, %v136_v40  ;;  %214 = vst [vmem:[%s478_s4 + $0x38] sm:$0xff] %v198_v39  ;;  %v185_v48 = vadd.f32 %v283_v22, %v137_v46  ;;  %v138_v49 = vsel %vm106_vm11, %v90_v31, %v122_v41  ;;  %v91_v50 = vadd.f32 %v352_v7, %v68_v42 }
  0x1d   :  { %v287_v51 = vunpack.c.l.bf16 %v305_v38  ;;  %215 = vst [vmem:[%s478_s4 + $0x40] sm:$0xff] %v199_v44  ;;  %v186_v53 = vadd.f32 %v284_v32, %v138_v49  ;;  %v69_v54 = vmul.f32 %v256_v47, %v338_v1  ;;  %v259_v55 = vunpack.c.l.bf16 %v299_v43 }
  0x1e   :  { %v200_v52 = vmul.f32 0.5, %v184_v45  ;;  %v201_v56 = vmul.f32 0.5, %v185_v48  ;;  %vm107_vm12 = vcmp.gt.f32.partialorder %v91_v50, 0.0  ;;  %v123_v57 = vmul.f32 0.2, %v91_v50 }
  0x1f   :  { %v202_v58 = vmul.f32 0.5, %v186_v53  ;;  %v92_v59 = vadd.f32 %v352_v7, %v69_v54  ;;  %v70_v60 = vmul.f32 %v259_v55, %v338_v1  ;;  %v260_v62 = vunpack.c.h.bf16 %v299_v43 }
  0x20   :  { %216 = vst [vmem:[%s478_s4 + $0x48] sm:$0xff] %v200_v52  ;;  %217 = vst [vmem:[%s478_s4 + $0x50] sm:$0xff] %v201_v56  ;;  %v139_v63 = vsel %vm107_vm12, %v91_v50, %v123_v57  ;;  %v288_v0 = vunpack.c.h.bf16 %v305_v38  ;;  %v291_v5 = vunpack.c.l.bf16 %v306_v61  ;;  %v292_v14 = vunpack.c.h.bf16 %v306_v61 }
  0x21   :  { %218 = vst [vmem:[%s478_s4 + $0x58] sm:$0xff] %v202_v58  ;;  %v187_v2 = vadd.f32 %v287_v51, %v139_v63  ;;  %vm108_vm13 = vcmp.gt.f32.partialorder %v92_v59, 0.0  ;;  %v124_v3 = vmul.f32 0.2, %v92_v59  ;;  %v93_v4 = vadd.f32 %v352_v7, %v70_v60 }
  0x22   :  { %v71_v6 = vmul.f32 %v260_v62, %v338_v1 }
  0x23   :  { %v203_v8 = vmul.f32 0.5, %v187_v2  ;;  %v140_v9 = vsel %vm108_vm13, %v92_v59, %v124_v3  ;;  %vm109_vm14 = vcmp.gt.f32.partialorder %v93_v4, 0.0  ;;  %v125_v10 = vmul.f32 0.2, %v93_v4 }
  0x24   :  { %v188_v11 = vadd.f32 %v288_v0, %v140_v9  ;;  %v94_v12 = vadd.f32 %v352_v7, %v71_v6 }
  0x25   :  { %219 = vst [vmem:[%s478_s4 + $0x60] sm:$0xff] %v203_v8  ;;  %v141_v13 = vsel %vm109_vm14, %v93_v4, %v125_v10 }
  0x26   :  { %v204_v15 = vmul.f32 0.5, %v188_v11  ;;  %v189_v16 = vadd.f32 %v291_v5, %v141_v13  ;;  %vm110_vm15 = vcmp.gt.f32.partialorder %v94_v12, 0.0  ;;  %v126_v17 = vmul.f32 0.2, %v94_v12 }
  0x28   :  { %220 = vst [vmem:[%s478_s4 + $0x68] sm:$0xff] %v204_v15  ;;  %v205_v1 = vmul.f32 0.5, %v189_v16  ;;  %v142_v18 = vsel %vm110_vm15, %v94_v12, %v126_v17 }
  0x29   :  { %v190_v19 = vadd.f32 %v292_v14, %v142_v18 }
  0x2a   :  { %221 = vst [vmem:[%s478_s4 + $0x70] sm:$0xff] %v205_v1 }
  0x2b   :  { %v206_v7 = vmul.f32 0.5, %v190_v19 }
  0x2d   :  { %222 = vst [vmem:[%s478_s4 + $0x78] sm:$0xff] %v206_v7 }

// kernel: down_block_comp_forward.10
= control target key start
LH: loop header
LB: loop body
LE: loop exit
PB: predicated region body
PF: predicated region fallthrough
CT: control target
= control target key end

     0   :  { %s3002_s1 = inlined_call_operand.vmem [shape: bf16[1152,128], index: 1, kind: input, shape index: {}]   ;;  %s3003_s0 = inlined_call_operand.vmem [shape: bf16[128,1152], index: 0, kind: input, shape index: {}]   ;;  %s3004_s3 = inlined_call_operand.vmem [shape: f32[1,128], index: 3, kind: output, shape index: {1}]   ;;  %s3005_s4 = inlined_call_operand.vmem [shape: f32[1,128], index: 4, kind: output, shape index: {2}]   ;;  %s3006_s2 = inlined_call_operand.vmem [shape: bf16[128,128], index: 2, kind: output, shape index: {0}]  }
   0x1   :  { %v2230_v0 = vld [vmem:[%s3002_s1 + $0x40] sm:$0xff]   ;;  %v2234_v4 = vld [vmem:[%s3002_s1 + $0x48] sm:$0xff]   ;;  %v2238_v8 = vld [vmem:[%s3002_s1 + $0x50] sm:$0xff]  }
   0x2   :  { %v2231_v1 = vld [vmem:[%s3002_s1 + $0xc0] sm:$0xff]   ;;  %1909 = vmatprep.subr.bf16.mxu0 %v2230_v0  ;;  %v2235_v5 = vld [vmem:[%s3002_s1 + $0xc8] sm:$0xff]   ;;  %v2239_v9 = vld [vmem:[%s3002_s1 + $0xd0] sm:$0xff]  }
   0x3   :  { %v2232_v2 = vld [vmem:[%s3002_s1] sm:$0xff]   ;;  %1973 = vmatprep.subr.bf16.mxu1 %v2231_v1  ;;  %v2236_v6 = vld [vmem:[%s3002_s1 + $0x8] sm:$0xff]   ;;  %v2240_v10 = vld [vmem:[%s3002_s1 + $0x10] sm:$0xff]  }
   0x4   :  { %v2233_v3 = vld [vmem:[%s3002_s1 + $0x80] sm:$0xff]   ;;  %1910 = vmatpush3.bf16.msra.mxu0 %v2232_v2  ;;  %v2237_v7 = vld [vmem:[%s3002_s1 + $0x88] sm:$0xff]   ;;  %v2241_v11 = vld [vmem:[%s3002_s1 + $0x90] sm:$0xff]  }
   0x5   :  { %1974 = vmatpush3.bf16.msra.mxu1 %v2233_v3  ;;  %1911 = vmatprep.subr.bf16.mxu0 %v2234_v4  ;;  %v2242_v12 = vld [vmem:[%s3002_s1 + $0x58] sm:$0xff]   ;;  %v2246_v16 = vld [vmem:[%s3002_s1 + $0x60] sm:$0xff]   ;;  %v2250_v20 = vld [vmem:[%s3002_s1 + $0x68] sm:$0xff]  }
   0x6   :  { %1975 = vmatprep.subr.bf16.mxu1 %v2235_v5  ;;  %v2243_v13 = vld [vmem:[%s3002_s1 + $0xd8] sm:$0xff]   ;;  %v2247_v17 = vld [vmem:[%s3002_s1 + $0xe0] sm:$0xff]   ;;  %v2251_v21 = vld [vmem:[%s3002_s1 + $0xe8] sm:$0xff]  }
   0x7   :  { %v2244_v14 = vld [vmem:[%s3002_s1 + $0x18] sm:$0xff]   ;;  %v2248_v18 = vld [vmem:[%s3002_s1 + $0x20] sm:$0xff]   ;;  %v2252_v22 = vld [vmem:[%s3002_s1 + $0x28] sm:$0xff]  }
   0x8   :  { %1912 = vmatpush3.bf16.msra.mxu0 %v2236_v6  ;;  %v2245_v15 = vld [vmem:[%s3002_s1 + $0x98] sm:$0xff]   ;;  %v2249_v19 = vld [vmem:[%s3002_s1 + $0xa0] sm:$0xff]   ;;  %v2253_v23 = vld [vmem:[%s3002_s1 + $0xa8] sm:$0xff]  }
   0x9   :  { %1976 = vmatpush3.bf16.msra.mxu1 %v2237_v7  ;;  %1913 = vmatprep.subr.bf16.mxu0 %v2238_v8  ;;  %v2254_v24 = vld [vmem:[%s3002_s1 + $0x70] sm:$0xff]   ;;  %v2258_v28 = vld [vmem:[%s3002_s1 + $0x78] sm:$0xff]   ;;  %v2262_v32 = vld [vmem:[%s3003_s0] ss:$36 sps:$4 sm:$0xff]  }
   0xa   :  { %1977 = vmatprep.subr.bf16.mxu1 %v2239_v9  ;;  %v2255_v25 = vld [vmem:[%s3002_s1 + $0xf0] sm:$0xff]   ;;  %v2259_v29 = vld [vmem:[%s3002_s1 + $0xf8] sm:$0xff]   ;;  %v2264_v33 = vld [vmem:[%s3003_s0 + $0x4] ss:$36 sps:$4 sm:$0xff]  }
   0xb   :  { %v2256_v26 = vld [vmem:[%s3002_s1 + $0x30] sm:$0xff]   ;;  %v2260_v30 = vld [vmem:[%s3002_s1 + $0x38] sm:$0xff]   ;;  %v2265_v34 = vld [vmem:[%s3003_s0 + $0x8] ss:$36 sps:$4 sm:$0xff]   ;;  %1077 = vmatprep.mubr.bf16.mxu0 %v2264_v33 }
   0xc   :  { %1914 = vmatpush3.bf16.msra.mxu0 %v2240_v10  ;;  %v2257_v27 = vld [vmem:[%s3002_s1 + $0xb0] sm:$0xff]   ;;  %v2261_v31 = vld [vmem:[%s3002_s1 + $0xb8] sm:$0xff]   ;;  %v2268_v36 = vld [vmem:[%s3002_s1 + $0x140] sm:$0xff]  }
   0xd   :  { %1978 = vmatpush3.bf16.msra.mxu1 %v2241_v11  ;;  %1915 = vmatprep.subr.bf16.mxu0 %v2242_v12  ;;  %v2267_v35 = vld [vmem:[%s3003_s0 + $0xc] ss:$36 sps:$4 sm:$0xff]   ;;  %v2269_v37 = vld [vmem:[%s3002_s1 + $0x100] sm:$0xff]   ;;  %v2272_v39 = vld [vmem:[%s3003_s0 + $0x54] ss:$36 sps:$4 sm:$0xff]  }
   0xe   :  { %1979 = vmatprep.subr.bf16.mxu1 %v2243_v13  ;;  %1174 = vmatprep.mubr.bf16.mxu1 %v2267_v35  ;;  %v2270_v38 = vld [vmem:[%s3003_s0 + $0x4c] ss:$36 sps:$4 sm:$0xff]   ;;  %v2278_v44 = vld [vmem:[%s3003_s0 + $0x94] ss:$36 sps:$4 sm:$0xff]   ;;  %v2280_v45 = vld [vmem:[%s3003_s0 + $0x9c] ss:$36 sps:$4 sm:$0xff]  }
   0xf   :  { %v2274_v40 = vld [vmem:[%s3003_s0 + $0x48] ss:$36 sps:$4 sm:$0xff]   ;;  %v2275_v41 = vld [vmem:[%s3003_s0 + $0x50] ss:$36 sps:$4 sm:$0xff]   ;;  %v2285_v47 = vld [vmem:[%s3002_s1 + $0x1c0] sm:$0xff]  }
  0x10   :  { %1916 = vmatpush3.bf16.msra.mxu0 %v2244_v14  ;;  %v2276_v42 = vld [vmem:[%s3002_s1 + $0x148] sm:$0xff]   ;;  %v2284_v46 = vld [vmem:[%s3002_s1 + $0x150] sm:$0xff]   ;;  %v2287_v50 = vld [vmem:[%s3002_s1 + $0x180] sm:$0xff]  }
  0x11   :  { %1980 = vmatpush3.bf16.msra.mxu1 %v2245_v15  ;;  %1917 = vmatprep.subr.bf16.mxu0 %v2246_v16  ;;  %v2277_v43 = vld [vmem:[%s3002_s1 + $0x108] sm:$0xff]   ;;  %v2282_v48 = vld [vmem:[%s3003_s0 + $0x90] ss:$36 sps:$4 sm:$0xff]   ;;  %v2283_v51 = vld [vmem:[%s3003_s0 + $0x98] ss:$36 sps:$4 sm:$0xff]  }
  0x12   :  { %1981 = vmatprep.subr.bf16.mxu1 %v2247_v17  ;;  %v2286_v49 = vld [vmem:[%s3002_s1 + $0x110] sm:$0xff]   ;;  %v2288_v52 = vld [vmem:[%s3003_s0 + $0xdc] ss:$36 sps:$4 sm:$0xff]   ;;  %v2290_v53 = vld [vmem:[%s3003_s0 + $0xe4] ss:$36 sps:$4 sm:$0xff]  }
  0x13   :  { %v2294_v54 = vld [vmem:[%s3002_s1 + $0x158] sm:$0xff]   ;;  %v2295_v55 = vld [vmem:[%s3002_s1 + $0x1c8] sm:$0xff]   ;;  %v2293_v59 = vld [vmem:[%s3003_s0 + $0xe0] ss:$36 sps:$4 sm:$0xff]  }
  0x14   :  { %1918 = vmatpush3.bf16.msra.mxu0 %v2248_v18  ;;  %v2296_v56 = vld [vmem:[%s3002_s1 + $0x118] sm:$0xff]   ;;  %v2297_v57 = vld [vmem:[%s3002_s1 + $0x188] sm:$0xff]   ;;  %v2304_v62 = vld [vmem:[%s3002_s1 + $0x160] sm:$0xff]  }
  0x15   :  { %1982 = vmatpush3.bf16.msra.mxu1 %v2249_v19  ;;  %1919 = vmatprep.subr.bf16.mxu0 %v2250_v20  ;;  %v2292_v58 = vld [vmem:[%s3003_s0 + $0xd8] ss:$36 sps:$4 sm:$0xff]   ;;  %v2298_v60 = vld [vmem:[%s3003_s0 + $0x124] ss:$36 sps:$4 sm:$0xff]   ;;  %v2300_v61 = vld [vmem:[%s3003_s0 + $0x12c] ss:$36 sps:$4 sm:$0xff]  }
  0x16   :  { %1983 = vmatprep.subr.bf16.mxu1 %v2251_v21  ;;  %v2305_v63 = vld [vmem:[%s3002_s1 + $0x1d0] sm:$0xff]   ;;  %v2306_v0 = vld [vmem:[%s3002_s1 + $0x120] sm:$0xff]   ;;  %v2303_v3 = vld [vmem:[%s3003_s0 + $0x128] ss:$36 sps:$4 sm:$0xff]  }
  0x17   :  { %v2307_v1 = vld [vmem:[%s3002_s1 + $0x190] sm:$0xff]   ;;  %v2302_v2 = vld [vmem:[%s3003_s0 + $0x120] ss:$36 sps:$4 sm:$0xff]   ;;  %v2314_v6 = vld [vmem:[%s3002_s1 + $0x168] sm:$0xff]  }
  0x18   :  { %1920 = vmatpush3.bf16.msra.mxu0 %v2252_v22  ;;  %v2308_v4 = vld [vmem:[%s3003_s0 + $0x16c] ss:$36 sps:$4 sm:$0xff]   ;;  %v2310_v5 = vld [vmem:[%s3003_s0 + $0x174] ss:$36 sps:$4 sm:$0xff]   ;;  %v2320_v14 = vld [vmem:[%s3003_s0 + $0x1bc] ss:$36 sps:$4 sm:$0xff]  }
  0x19   :  { %1984 = vmatpush3.bf16.msra.mxu1 %v2253_v23  ;;  %1921 = vmatprep.subr.bf16.mxu0 %v2254_v24  ;;  %v2315_v7 = vld [vmem:[%s3002_s1 + $0x1d8] sm:$0xff]   ;;  %v2316_v8 = vld [vmem:[%s3002_s1 + $0x128] sm:$0xff]   ;;  %v2313_v11 = vld [vmem:[%s3003_s0 + $0x170] ss:$36 sps:$4 sm:$0xff]  }
  0x1a   :  { %1985 = vmatprep.subr.bf16.mxu1 %v2255_v25  ;;  %v2317_v9 = vld [vmem:[%s3002_s1 + $0x198] sm:$0xff]   ;;  %v2312_v10 = vld [vmem:[%s3003_s0 + $0x168] ss:$36 sps:$4 sm:$0xff]   ;;  %v2324_v13 = vld [vmem:[%s3002_s1 + $0x170] sm:$0xff]  }
  0x1b   :  { %v2318_v12 = vld [vmem:[%s3003_s0 + $0x1b4] ss:$36 sps:$4 sm:$0xff]   ;;  %v2325_v15 = vld [vmem:[%s3002_s1 + $0x1e0] sm:$0xff]   ;;  %v2328_v18 = vld [vmem:[%s3002_s1 + $0x1e8] sm:$0xff]  }
  0x1c   :  { %1922 = vmatpush3.bf16.msra.mxu0 %v2256_v26  ;;  %v2326_v16 = vld [vmem:[%s3002_s1 + $0x130] sm:$0xff]   ;;  %v2327_v17 = vld [vmem:[%s3002_s1 + $0x1a0] sm:$0xff]   ;;  %v2329_v19 = vld [vmem:[%s3002_s1 + $0x1a8] sm:$0xff]  }
  0x1d   :  { %1986 = vmatpush3.bf16.msra.mxu1 %v2257_v27  ;;  %1923 = vmatprep.subr.bf16.mxu0 %v2258_v28  ;;  %v2322_v20 = vld [vmem:[%s3003_s0 + $0x1b0] ss:$36 sps:$4 sm:$0xff]   ;;  %v2323_v21 = vld [vmem:[%s3003_s0 + $0x1b8] ss:$36 sps:$4 sm:$0xff]   ;;  %v2332_v23 = vld [vmem:[%s3003_s0 + $0x204] ss:$36 sps:$4 sm:$0xff]  }
  0x1e   :  { %1987 = vmatprep.subr.bf16.mxu1 %v2259_v29  ;;  %v2330_v22 = vld [vmem:[%s3003_s0 + $0x1fc] ss:$36 sps:$4 sm:$0xff]   ;;  %v2337_v25 = vld [vmem:[%s3002_s1 + $0x1f0] sm:$0xff]  }
  0x1f   :  { %v2336_v24 = vld [vmem:[%s3002_s1 + $0x178] sm:$0xff]   ;;  %v2339_v27 = vld [vmem:[%s3002_s1 + $0x1b0] sm:$0xff]  }
  0x20   :  { %1924 = vmatpush3.bf16.msra.mxu0 %v2260_v30  ;;  %v2338_v26 = vld [vmem:[%s3002_s1 + $0x138] sm:$0xff]   ;;  %v2335_v30 = vld [vmem:[%s3003_s0 + $0x200] ss:$36 sps:$4 sm:$0xff]   ;;  %v2342_v35 = vld [vmem:[%s3003_s0 + $0x10] ss:$36 sps:$4 sm:$0xff]  }
  0x21   :  { %1988 = vmatpush3.bf16.msra.mxu1 %v2261_v31  ;;  %2037 = vmatprep.subr.bf16.mxu0 %v2268_v36  ;;  %v2340_v28 = vld [vmem:[%s3002_s1 + $0x1f8] sm:$0xff]  }
  0x22   :  { %2101 = vmatprep.subr.bf16.mxu1 %v2285_v47  ;;  %v2334_v29 = vld [vmem:[%s3003_s0 + $0x1f8] ss:$36 sps:$4 sm:$0xff]   ;;  %v2360_v47 = vld [vmem:[%s3003_s0 + $0xa0] ss:$36 sps:$4 sm:$0xff]  }
  0x23   :  { %1078 = vmatmul.mubr.bf16.vlgmr.msra.gmra.mrb[0].mxu0 %v2262_v32  ;;  %v2341_v31 = vld [vmem:[%s3002_s1 + $0x1b8] sm:$0xff]   ;;  %v2348_v32 = vld [vmem:[%s3002_s1 + $0x200] sm:$0xff]  }
  0x24   :  { %1175 = vmatmul.mubr.bf16.vlgmr.msra.gmra.mrb[0].mxu1 %v2265_v34  ;;  %2038 = vmatpush3.bf16.msra.mxu0 %v2269_v37  ;;  %v2344_v33 = vld [vmem:[%s3003_s0 + $0x14] ss:$36 sps:$4 sm:$0xff]   ;;  %v2347_v34 = vld [vmem:[%s3003_s0 + $0x1c] ss:$36 sps:$4 sm:$0xff]  }
  0x25   :  { %1085 = vmatprep.mubr.bf16.mxu0 %v2270_v38  ;;  %1182 = vmatprep.mubr.bf16.mxu1 %v2272_v39  ;;  %v2345_v36 = vld [vmem:[%s3003_s0 + $0x18] ss:$36 sps:$4 sm:$0xff]   ;;  %v2351_v38 = vld [vmem:[%s3003_s0 + $0x64] ss:$36 sps:$4 sm:$0xff]  }
  0x26   :  { %2039 = vmatprep.subr.bf16.mxu0 %v2276_v42  ;;  %2102 = vmatpush3.bf16.msra.mxu1 %v2287_v50  ;;  %v2349_v37 = vld [vmem:[%s3003_s0 + $0x5c] ss:$36 sps:$4 sm:$0xff]   ;;  %v2355_v39 = vld [vmem:[%s3002_s1 + $0x208] sm:$0xff]   ;;  %v2365_v50 = vld [vmem:[%s3003_s0 + $0xf4] ss:$36 sps:$4 sm:$0xff]  }
  0x27   :  { %2103 = vmatprep.subr.bf16.mxu1 %v2295_v55  ;;  %v2354_v42 = vld [vmem:[%s3003_s0 + $0x60] ss:$36 sps:$4 sm:$0xff]   ;;  %v2370_v55 = vld [vmem:[%s3003_s0 + $0x134] ss:$36 sps:$4 sm:$0xff]  }
  0x28   :  { %2040 = vmatpush3.bf16.msra.mxu0 %v2277_v43  ;;  %v2356_v43 = vld [vmem:[%s3003_s0 + $0xa4] ss:$36 sps:$4 sm:$0xff]  }
  0x29   :  { %2041 = vmatprep.subr.bf16.mxu0 %v2284_v46  ;;  %v2376_v46 = vld [vmem:[%s3002_s1 + $0x220] sm:$0xff]  }
  0x2a   :  { %2104 = vmatpush3.bf16.msra.mxu1 %v2297_v57  ;;  %v2397_v57 = vld [vmem:[%s3002_s1 + $0x238] sm:$0xff]  }
  0x2b   :  { %1086 = vmatmul.mubr.bf16.gmra.mrb[4].mxu0 %v2274_v40  ;;  %2105 = vmatprep.subr.bf16.mxu1 %v2305_v63  ;;  %v2362_v40 = vld [vmem:[%s3002_s1 + $0x210] sm:$0xff]   ;;  %v2382_v63 = vld [vmem:[%s3003_s0 + $0x180] ss:$36 sps:$4 sm:$0xff]  }
  0x2c   :  { %1183 = vmatmul.mubr.bf16.gmra.mrb[4].mxu1 %v2275_v41  ;;  %1093 = vmatprep.mubr.bf16.mxu0 %v2278_v44  ;;  %v2353_v41 = vld [vmem:[%s3003_s0 + $0x58] ss:$36 sps:$4 sm:$0xff]   ;;  %v2358_v44 = vld [vmem:[%s3003_s0 + $0xac] ss:$36 sps:$4 sm:$0xff]  }
  0x2d   :  { %1190 = vmatprep.mubr.bf16.mxu1 %v2280_v45  ;;  %2042 = vmatpush3.bf16.msra.mxu0 %v2286_v49  ;;  %v2369_v45 = vld [vmem:[%s3002_s1 + $0x218] sm:$0xff]   ;;  %v2363_v49 = vld [vmem:[%s3003_s0 + $0xec] ss:$36 sps:$4 sm:$0xff]  }
  0x2e   :  { %2043 = vmatprep.subr.bf16.mxu0 %v2294_v54  ;;  %2106 = vmatpush3.bf16.msra.mxu1 %v2307_v1  ;;  %v2368_v54 = vld [vmem:[%s3003_s0 + $0xf0] ss:$36 sps:$4 sm:$0xff]  }
  0x2f   :  { %2107 = vmatprep.subr.bf16.mxu1 %v2315_v7  ;;  %v2386_v1 = vld [vmem:[%s3003_s0 + $0x1cc] ss:$36 sps:$4 sm:$0xff]  }
  0x30   :  { %v2396_v7 = vld [vmem:[%s3003_s0 + $0x210] ss:$36 sps:$4 sm:$0xff]  }
  0x31   :  { %2044 = vmatpush3.bf16.msra.mxu0 %v2296_v56  ;;  %v2372_v56 = vld [vmem:[%s3003_s0 + $0x13c] ss:$36 sps:$4 sm:$0xff]  }
  0x32   :  { %2045 = vmatprep.subr.bf16.mxu0 %v2304_v62  ;;  %2108 = vmatpush3.bf16.msra.mxu1 %v2317_v9  ;;  %v2381_v62 = vld [vmem:[%s3003_s0 + $0x178] ss:$36 sps:$4 sm:$0xff]   ;;  %v2399_v9 = vld [vmem:[%s3003_s0 + $0x140] ss:$36 sps:$4 sm:$0xff]  }
  0x33   :  { %1094 = vmatmul.mubr.bf16.gmra.mrb[8].mxu0 %v2282_v48  ;;  %2109 = vmatprep.subr.bf16.mxu1 %v2325_v15  ;;  %v2361_v48 = vld [vmem:[%s3003_s0 + $0xa8] ss:$36 sps:$4 sm:$0xff]   ;;  %v2405_v15 = vld [vmem:[%s3003_s0 + $0x218] ss:$36 sps:$4 sm:$0xff]  }
  0x34   :  { %1191 = vmatmul.mubr.bf16.gmra.mrb[8].mxu1 %v2283_v51  ;;  %1101 = vmatprep.mubr.bf16.mxu0 %v2288_v52  ;;  %v2383_v51 = vld [vmem:[%s3002_s1 + $0x228] sm:$0xff]  }
  0x35   :  { %1198 = vmatprep.mubr.bf16.mxu1 %v2290_v53  ;;  %2046 = vmatpush3.bf16.msra.mxu0 %v2306_v0  ;;  %v2367_v52 = vld [vmem:[%s3003_s0 + $0xe8] ss:$36 sps:$4 sm:$0xff]   ;;  %v2390_v53 = vld [vmem:[%s3002_s1 + $0x230] sm:$0xff]  }
  0x36   :  { %2047 = vmatprep.subr.bf16.mxu0 %v2314_v6  ;;  %2110 = vmatpush3.bf16.msra.mxu1 %v2327_v17  ;;  %v2384_v0 = vld [vmem:[%s3003_s0 + $0x1c4] ss:$36 sps:$4 sm:$0xff]  }
  0x37   :  { %2111 = vmatprep.subr.bf16.mxu1 %v2328_v18  ;;  %v2395_v6 = vld [vmem:[%s3003_s0 + $0x208] ss:$36 sps:$4 sm:$0xff]  }
  0x39   :  { %2048 = vmatpush3.bf16.msra.mxu0 %v2316_v8  ;;  %v2398_v8 = vld [vmem:[%s3003_s0 + $0x20] ss:$36 sps:$4 sm:$0xff]  }
  0x3a   :  { %2049 = vmatprep.subr.bf16.mxu0 %v2324_v13  ;;  %2112 = vmatpush3.bf16.msra.mxu1 %v2329_v19  ;;  %v2403_v13 = vld [vmem:[%s3003_s0 + $0x1d0] ss:$36 sps:$4 sm:$0xff]  }
  0x3b   :  { %1102 = vmatmul.mubr.bf16.gmra.mrb[12].mxu0 %v2292_v58  ;;  %2113 = vmatprep.subr.bf16.mxu1 %v2337_v25  ;;  %v2374_v58 = vld [vmem:[%s3003_s0 + $0x130] ss:$36 sps:$4 sm:$0xff]  }
  0x3c   :  { %1199 = vmatmul.mubr.bf16.gmra.mrb[12].mxu1 %v2293_v59  ;;  %1109 = vmatprep.mubr.bf16.mxu0 %v2298_v60  ;;  %v2375_v59 = vld [vmem:[%s3003_s0 + $0x138] ss:$36 sps:$4 sm:$0xff]  }
  0x3d   :  { %1206 = vmatprep.mubr.bf16.mxu1 %v2300_v61  ;;  %2050 = vmatpush3.bf16.msra.mxu0 %v2326_v16  ;;  %v2377_v60 = vld [vmem:[%s3003_s0 + $0x17c] ss:$36 sps:$4 sm:$0xff]   ;;  %v2379_v61 = vld [vmem:[%s3003_s0 + $0x184] ss:$36 sps:$4 sm:$0xff]  }
  0x3e   :  { %2051 = vmatprep.subr.bf16.mxu0 %v2336_v24  ;;  %2114 = vmatpush3.bf16.msra.mxu1 %v2339_v27 }
  0x3f   :  { %2115 = vmatprep.subr.bf16.mxu1 %v2340_v28 }
  0x41   :  { %2052 = vmatpush3.bf16.msra.mxu0 %v2338_v26 }
  0x42   :  { %2181 = vmatprep.subr.bf16.mxu0 %v2348_v32  ;;  %2116 = vmatpush3.bf16.msra.mxu1 %v2341_v31 }
  0x43   :  { %1110 = vmatmul.mubr.bf16.gmra.mrb[16].mxu0 %v2302_v2  ;;  %2213 = vmatprep.subr.bf16.mxu1 %v2348_v32  ;;  %v2388_v2 = vld [vmem:[%s3003_s0 + $0x1c0] ss:$36 sps:$4 sm:$0xff]  }
  0x44   :  { %1207 = vmatmul.mubr.bf16.gmra.mrb[16].mxu1 %v2303_v3  ;;  %1117 = vmatprep.mubr.bf16.mxu0 %v2308_v4  ;;  %v2389_v3 = vld [vmem:[%s3003_s0 + $0x1c8] ss:$36 sps:$4 sm:$0xff]  }
  0x45   :  { %1214 = vmatprep.mubr.bf16.mxu1 %v2310_v5  ;;  %v2391_v4 = vld [vmem:[%s3003_s0 + $0x20c] ss:$36 sps:$4 sm:$0xff]   ;;  %v2393_v5 = vld [vmem:[%s3003_s0 + $0x214] ss:$36 sps:$4 sm:$0xff]  }
  0x4b   :  { %1118 = vmatmul.mubr.bf16.gmra.mrb[20].mxu0 %v2312_v10  ;;  %v2400_v10 = vld [vmem:[%s3003_s0 + $0x68] ss:$36 sps:$4 sm:$0xff]  }
  0x4c   :  { %1215 = vmatmul.mubr.bf16.gmra.mrb[20].mxu1 %v2313_v11  ;;  %1125 = vmatprep.mubr.bf16.mxu0 %v2318_v12  ;;  %v2401_v11 = vld [vmem:[%s3003_s0 + $0x188] ss:$36 sps:$4 sm:$0xff]   ;;  %v2402_v12 = vld [vmem:[%s3003_s0 + $0xb0] ss:$36 sps:$4 sm:$0xff]  }
  0x4d   :  { %1222 = vmatprep.mubr.bf16.mxu1 %v2320_v14  ;;  %v2404_v14 = vld [vmem:[%s3003_s0 + $0xf8] ss:$36 sps:$4 sm:$0xff]  }
  0x53   :  { %1126 = vmatmul.mubr.bf16.gmra.mrb[24].mxu0 %v2322_v20 }
  0x54   :  { %1223 = vmatmul.mubr.bf16.gmra.mrb[24].mxu1 %v2323_v21  ;;  %1133 = vmatprep.mubr.bf16.mxu0 %v2330_v22 }
  0x55   :  { %1230 = vmatprep.mubr.bf16.mxu1 %v2332_v23 }
  0x5b   :  { %1134 = vmatmul.mubr.bf16.gmra.mrb[28].mxu0 %v2334_v29 }
  0x5c   :  { %1231 = vmatmul.mubr.bf16.gmra.mrb[28].mxu1 %v2335_v30  ;;  %1271 = vmatprep.mubr.bf16.mxu0 %v2344_v33 }
  0x5d   :  { %1368 = vmatprep.mubr.bf16.mxu1 %v2347_v34 }
  0x63   :  { %1272 = vmatmul.mubr.bf16.vlgmr.msra.gmra.mrb[32].mxu0 %v2342_v35 }
  0x64   :  { %1369 = vmatmul.mubr.bf16.vlgmr.msra.gmra.mrb[32].mxu1 %v2345_v36  ;;  %2182 = vmatpush3.bf16.msra.mxu0 %v2348_v32 }
  0x65   :  { %1279 = vmatprep.mubr.bf16.mxu0 %v2349_v37  ;;  %1376 = vmatprep.mubr.bf16.mxu1 %v2351_v38 }
  0x66   :  { %2183 = vmatprep.subr.bf16.mxu0 %v2355_v39  ;;  %2221 = vmatpush3.bf16.msra.mxu1 %v2348_v32 }
  0x67   :  { %2214 = vmatprep.subr.bf16.mxu1 %v2355_v39 }
  0x68   :  { %2184 = vmatpush3.bf16.msra.mxu0 %v2355_v39 }
  0x69   :  { %2185 = vmatprep.subr.bf16.mxu0 %v2362_v40 }
  0x6a   :  { %2222 = vmatpush3.bf16.msra.mxu1 %v2355_v39 }
  0x6b   :  { %1280 = vmatmul.mubr.bf16.gmra.mrb[36].mxu0 %v2353_v41  ;;  %2215 = vmatprep.subr.bf16.mxu1 %v2362_v40 }
  0x6c   :  { %1377 = vmatmul.mubr.bf16.gmra.mrb[36].mxu1 %v2354_v42  ;;  %1287 = vmatprep.mubr.bf16.mxu0 %v2356_v43 }
  0x6d   :  { %1384 = vmatprep.mubr.bf16.mxu1 %v2358_v44  ;;  %2186 = vmatpush3.bf16.msra.mxu0 %v2362_v40 }
  0x6e   :  { %2187 = vmatprep.subr.bf16.mxu0 %v2369_v45  ;;  %2223 = vmatpush3.bf16.msra.mxu1 %v2362_v40 }
  0x6f   :  { %2216 = vmatprep.subr.bf16.mxu1 %v2369_v45 }
  0x71   :  { %2188 = vmatpush3.bf16.msra.mxu0 %v2369_v45 }
  0x72   :  { %2189 = vmatprep.subr.bf16.mxu0 %v2376_v46  ;;  %2224 = vmatpush3.bf16.msra.mxu1 %v2369_v45 }
  0x73   :  { %1288 = vmatmul.mubr.bf16.gmra.mrb[40].mxu0 %v2360_v47  ;;  %2217 = vmatprep.subr.bf16.mxu1 %v2376_v46 }
  0x74   :  { %1385 = vmatmul.mubr.bf16.gmra.mrb[40].mxu1 %v2361_v48  ;;  %1295 = vmatprep.mubr.bf16.mxu0 %v2363_v49 }
  0x75   :  { %1392 = vmatprep.mubr.bf16.mxu1 %v2365_v50  ;;  %2190 = vmatpush3.bf16.msra.mxu0 %v2376_v46 }
  0x76   :  { %2191 = vmatprep.subr.bf16.mxu0 %v2383_v51  ;;  %2225 = vmatpush3.bf16.msra.mxu1 %v2376_v46 }
  0x77   :  { %2218 = vmatprep.subr.bf16.mxu1 %v2383_v51 }
  0x79   :  { %2192 = vmatpush3.bf16.msra.mxu0 %v2383_v51 }
  0x7a   :  { %2193 = vmatprep.subr.bf16.mxu0 %v2390_v53  ;;  %2226 = vmatpush3.bf16.msra.mxu1 %v2383_v51 }
  0x7b   :  { %1296 = vmatmul.mubr.bf16.gmra.mrb[44].mxu0 %v2367_v52  ;;  %2219 = vmatprep.subr.bf16.mxu1 %v2390_v53 }
  0x7c   :  { %1393 = vmatmul.mubr.bf16.gmra.mrb[44].mxu1 %v2368_v54  ;;  %1303 = vmatprep.mubr.bf16.mxu0 %v2370_v55 }
  0x7d   :  { %1400 = vmatprep.mubr.bf16.mxu1 %v2372_v56  ;;  %2194 = vmatpush3.bf16.msra.mxu0 %v2390_v53 }
  0x7e   :  { %2195 = vmatprep.subr.bf16.mxu0 %v2397_v57  ;;  %2227 = vmatpush3.bf16.msra.mxu1 %v2390_v53 }
  0x7f   :  { %2220 = vmatprep.subr.bf16.mxu1 %v2397_v57 }
  0x81   :  { %2196 = vmatpush3.bf16.msra.mxu0 %v2397_v57 }
  0x82   :  { %2228 = vmatpush3.bf16.msra.mxu1 %v2397_v57 }
  0x83   :  { %1304 = vmatmul.mubr.bf16.gmra.mrb[48].mxu0 %v2374_v58 }
  0x84   :  { %1401 = vmatmul.mubr.bf16.gmra.mrb[48].mxu1 %v2375_v59  ;;  %1311 = vmatprep.mubr.bf16.mxu0 %v2377_v60 }
  0x85   :  { %1408 = vmatprep.mubr.bf16.mxu1 %v2379_v61  ;;  %v2406_v61 = vmov 0.0  }
  0x86   :  { %19 = vst [vmem:[%s3004_s3] sm:$0x1] %v2406_v61  ;;  %20 = vst [vmem:[%s3005_s4] sm:$0x1] %v2406_v61 }
  0x8b   :  { %1312 = vmatmul.mubr.bf16.gmra.mrb[52].mxu0 %v2381_v62 }
  0x8c   :  { %1409 = vmatmul.mubr.bf16.gmra.mrb[52].mxu1 %v2382_v63  ;;  %1319 = vmatprep.mubr.bf16.mxu0 %v2384_v0 }
  0x8d   :  { %1416 = vmatprep.mubr.bf16.mxu1 %v2386_v1 }
  0x93   :  { %1320 = vmatmul.mubr.bf16.gmra.mrb[56].mxu0 %v2388_v2 }
  0x94   :  { %1417 = vmatmul.mubr.bf16.gmra.mrb[56].mxu1 %v2389_v3  ;;  %1327 = vmatprep.mubr.bf16.mxu0 %v2391_v4 }
  0x95   :  { %1424 = vmatprep.mubr.bf16.mxu1 %v2393_v5 }
  0x9b   :  { %1328 = vmatmul.mubr.bf16.gmra.mrb[60].mxu0 %v2395_v6 }
  0x9c   :  { %1425 = vmatmul.mubr.bf16.gmra.mrb[60].mxu1 %v2396_v7  ;;  %2197 = vmatprep.mubr.bf16.mxu0 %v2398_v8 }
  0x9d   :  { %2205 = vmatprep.mubr.bf16.mxu1 %v2399_v9 }
  0xa3   :  { %2198 = vmatmul.mubr.bf16.vlgmr.msra.gmra.mrb[64].mxu0 %v2400_v10 }
  0xa4   :  { %2206 = vmatmul.mubr.bf16.vlgmr.msra.gmra.mrb[64].mxu1 %v2401_v11  ;;  %2201 = vmatprep.mubr.bf16.mxu0 %v2402_v12 }
  0xa5   :  { %2209 = vmatprep.mubr.bf16.mxu1 %v2403_v13 }
  0xab   :  { %2202 = vmatmul.mubr.bf16.gmra.mrb[68].mxu0 %v2404_v14 }
  0xac   :  { %2210 = vmatmul.mubr.bf16.gmra.mrb[68].mxu1 %v2405_v15 }
  0xf6   :  { %v1925_v16 = vpop.f32.mrb[0].mxu0 }
  0xf7   :  { %v1989_v17 = vpop.f32.mrb[0].mxu1  ;;  %v1926_v18 = vpop.f32.mrb[1].mxu0 }
  0xf8   :  { %v1927_v19 = vadd.f32 %v1926_v18, %v1925_v16  ;;  %v1990_v20 = vpop.f32.mrb[1].mxu1  ;;  %v1928_v21 = vpop.f32.mrb[2].mxu0 }
  0xf9   :  { %v1991_v22 = vadd.f32 %v1990_v20, %v1989_v17  ;;  %v1992_v23 = vpop.f32.mrb[2].mxu1  ;;  %v1929_v24 = vpop.f32.mrb[3].mxu0 }
  0xfa   :  { %v1930_v25 = vadd.f32 %v1929_v24, %v1928_v21  ;;  %v1993_v26 = vpop.f32.mrb[3].mxu1 }
  0xfb   :  { %v2864_v27 = vadd.f32 %v1991_v22, %v1927_v19  ;;  %v1994_v28 = vadd.f32 %v1993_v26, %v1992_v23 }
  0xfd   :  { %v2866_v29 = vadd.f32 %v1994_v28, %v1930_v25 }
  0xfe   :  { %v1931_v30 = vpop.f32.mrb[4].mxu0 }
  0xff   :  { %v1995_v31 = vpop.f32.mrb[4].mxu1  ;;  %v1932_v32 = vpop.f32.mrb[5].mxu0 }
 0x100   :  { %v1933_v33 = vadd.f32 %v1932_v32, %v1931_v30  ;;  %v1996_v34 = vpop.f32.mrb[5].mxu1  ;;  %v1934_v35 = vpop.f32.mrb[6].mxu0 }
 0x101   :  { %v1997_v36 = vadd.f32 %v1996_v34, %v1995_v31  ;;  %v1998_v37 = vpop.f32.mrb[6].mxu1  ;;  %v1935_v38 = vpop.f32.mrb[7].mxu0 }
 0x102   :  { %v1936_v39 = vadd.f32 %v1935_v38, %v1934_v35  ;;  %v1999_v40 = vpop.f32.mrb[7].mxu1 }
 0x103   :  { %v2868_v41 = vadd.f32 %v1997_v36, %v1933_v33  ;;  %v2000_v42 = vadd.f32 %v1999_v40, %v1998_v37 }
 0x105   :  { %v2870_v43 = vadd.f32 %v2000_v42, %v1936_v39 }
 0x106   :  { %v1937_v44 = vpop.f32.mrb[8].mxu0 }
 0x107   :  { %v2001_v45 = vpop.f32.mrb[8].mxu1  ;;  %v1938_v46 = vpop.f32.mrb[9].mxu0 }
 0x108   :  { %v1939_v47 = vadd.f32 %v1938_v46, %v1937_v44  ;;  %v2002_v48 = vpop.f32.mrb[9].mxu1  ;;  %v1940_v49 = vpop.f32.mrb[10].mxu0 }
 0x109   :  { %v2003_v50 = vadd.f32 %v2002_v48, %v2001_v45  ;;  %v2004_v51 = vpop.f32.mrb[10].mxu1  ;;  %v1941_v52 = vpop.f32.mrb[11].mxu0 }
 0x10a   :  { %v1942_v53 = vadd.f32 %v1941_v52, %v1940_v49  ;;  %v2005_v54 = vpop.f32.mrb[11].mxu1 }
 0x10b   :  { %v2872_v55 = vadd.f32 %v2003_v50, %v1939_v47  ;;  %v2006_v56 = vadd.f32 %v2005_v54, %v2004_v51 }
 0x10d   :  { %v2874_v57 = vadd.f32 %v2006_v56, %v1942_v53 }
 0x10e   :  { %v1943_v58 = vpop.f32.mrb[12].mxu0 }
 0x10f   :  { %v2007_v59 = vpop.f32.mrb[12].mxu1  ;;  %v1944_v60 = vpop.f32.mrb[13].mxu0 }
 0x110   :  { %v1945_v62 = vadd.f32 %v1944_v60, %v1943_v58  ;;  %v2008_v63 = vpop.f32.mrb[13].mxu1  ;;  %v1946_v0 = vpop.f32.mrb[14].mxu0 }
 0x111   :  { %v2009_v1 = vadd.f32 %v2008_v63, %v2007_v59  ;;  %v2010_v2 = vpop.f32.mrb[14].mxu1  ;;  %v1947_v3 = vpop.f32.mrb[15].mxu0 }
 0x112   :  { %v1948_v4 = vadd.f32 %v1947_v3, %v1946_v0  ;;  %v2011_v5 = vpop.f32.mrb[15].mxu1 }
 0x113   :  { %v2882_v6 = vadd.f32 %v2009_v1, %v1945_v62  ;;  %v2012_v7 = vadd.f32 %v2011_v5, %v2010_v2 }
 0x115   :  { %v2884_v8 = vadd.f32 %v2012_v7, %v1948_v4 }
 0x116   :  { %v1949_v9 = vpop.f32.mrb[16].mxu0 }
 0x117   :  { %v2013_v10 = vpop.f32.mrb[16].mxu1  ;;  %v1950_v11 = vpop.f32.mrb[17].mxu0 }
 0x118   :  { %v1951_v12 = vadd.f32 %v1950_v11, %v1949_v9  ;;  %v2014_v13 = vpop.f32.mrb[17].mxu1  ;;  %v1952_v14 = vpop.f32.mrb[18].mxu0 }
 0x119   :  { %v2015_v15 = vadd.f32 %v2014_v13, %v2013_v10  ;;  %v2016_v16 = vpop.f32.mrb[18].mxu1  ;;  %v1953_v17 = vpop.f32.mrb[19].mxu0 }
 0x11a   :  { %v1954_v18 = vadd.f32 %v1953_v17, %v1952_v14  ;;  %v2017_v19 = vpop.f32.mrb[19].mxu1 }
 0x11b   :  { %v2886_v20 = vadd.f32 %v2015_v15, %v1951_v12  ;;  %v2018_v21 = vadd.f32 %v2017_v19, %v2016_v16 }
 0x11d   :  { %v2888_v22 = vadd.f32 %v2018_v21, %v1954_v18 }
 0x11e   :  { %v1955_v23 = vpop.f32.mrb[20].mxu0 }
 0x11f   :  { %v2019_v24 = vpop.f32.mrb[20].mxu1  ;;  %v1956_v25 = vpop.f32.mrb[21].mxu0 }
 0x120   :  { %v1957_v26 = vadd.f32 %v1956_v25, %v1955_v23  ;;  %v2020_v28 = vpop.f32.mrb[21].mxu1  ;;  %v1958_v30 = vpop.f32.mrb[22].mxu0 }
 0x121   :  { %v2021_v31 = vadd.f32 %v2020_v28, %v2019_v24  ;;  %v2022_v32 = vpop.f32.mrb[22].mxu1  ;;  %v1959_v33 = vpop.f32.mrb[23].mxu0 }
 0x122   :  { %v1960_v34 = vadd.f32 %v1959_v33, %v1958_v30  ;;  %v2023_v35 = vpop.f32.mrb[23].mxu1 }
 0x123   :  { %v2890_v36 = vadd.f32 %v2021_v31, %v1957_v26  ;;  %v2024_v37 = vadd.f32 %v2023_v35, %v2022_v32 }
 0x125   :  { %v2892_v38 = vadd.f32 %v2024_v37, %v1960_v34 }
 0x126   :  { %v1961_v39 = vpop.f32.mrb[24].mxu0 }
 0x127   :  { %v2025_v40 = vpop.f32.mrb[24].mxu1  ;;  %v1962_v42 = vpop.f32.mrb[25].mxu0 }
 0x128   :  { %v1963_v44 = vadd.f32 %v1962_v42, %v1961_v39  ;;  %v2026_v45 = vpop.f32.mrb[25].mxu1  ;;  %v1964_v46 = vpop.f32.mrb[26].mxu0 }
 0x129   :  { %v2027_v47 = vadd.f32 %v2026_v45, %v2025_v40  ;;  %v2028_v48 = vpop.f32.mrb[26].mxu1  ;;  %v1965_v49 = vpop.f32.mrb[27].mxu0 }
 0x12a   :  { %v1966_v50 = vadd.f32 %v1965_v49, %v1964_v46  ;;  %v2029_v51 = vpop.f32.mrb[27].mxu1 }
 0x12b   :  { %v2894_v52 = vadd.f32 %v2027_v47, %v1963_v44  ;;  %v2030_v53 = vadd.f32 %v2029_v51, %v2028_v48 }
 0x12d   :  { %v2896_v54 = vadd.f32 %v2030_v53, %v1966_v50 }
 0x12e   :  { %v1967_v56 = vpop.f32.mrb[28].mxu0 }
 0x12f   :  { %v2031_v58 = vpop.f32.mrb[28].mxu1  ;;  %v1968_v59 = vpop.f32.mrb[29].mxu0 }
 0x130   :  { %v1969_v60 = vadd.f32 %v1968_v59, %v1967_v56  ;;  %v2032_v61 = vpop.f32.mrb[29].mxu1  ;;  %v1970_v62 = vpop.f32.mrb[30].mxu0 }
 0x131   :  { %v2033_v63 = vadd.f32 %v2032_v61, %v2031_v58  ;;  %v2034_v0 = vpop.f32.mrb[30].mxu1  ;;  %v1971_v1 = vpop.f32.mrb[31].mxu0 }
 0x132   :  { %v1972_v2 = vadd.f32 %v1971_v1, %v1970_v62  ;;  %v2035_v3 = vpop.f32.mrb[31].mxu1 }
 0x133   :  { %v2898_v4 = vadd.f32 %v2033_v63, %v1969_v60  ;;  %v2036_v5 = vadd.f32 %v2035_v3, %v2034_v0 }
 0x135   :  { %v2900_v7 = vadd.f32 %v2036_v5, %v1972_v2 }
 0x136   :  { %v2053_v9 = vpop.f32.mrb[32].mxu0 }
 0x137   :  { %v2054_v10 = vpop.f32.mrb[33].mxu0  ;;  %v2117_v11 = vpop.f32.mrb[32].mxu1 }
 0x138   :  { %v2055_v12 = vadd.f32 %v2054_v10, %v2053_v9  ;;  %v2056_v13 = vpop.f32.mrb[34].mxu0  ;;  %v2118_v14 = vpop.f32.mrb[33].mxu1 }
 0x139   :  { %v2057_v15 = vpop.f32.mrb[35].mxu0  ;;  %v2119_v16 = vadd.f32 %v2118_v14, %v2117_v11  ;;  %v2120_v17 = vpop.f32.mrb[34].mxu1 }
 0x13a   :  { %v1274_v18 = vadd.f32 %v2055_v12, %v2864_v27  ;;  %v2058_v19 = vadd.f32 %v2057_v15, %v2056_v13  ;;  %v2121_v21 = vpop.f32.mrb[35].mxu1 }
 0x13b   :  { %v2122_v23 = vadd.f32 %v2121_v21, %v2120_v17 }
 0x13c   :  { %v1277_v24 = vadd.f32 %v2058_v19, %v2866_v29  ;;  %v2904_v25 = vadd.f32 %v2119_v16, %v1274_v18 }
 0x13e   :  { %v2059_v26 = vpop.f32.mrb[36].mxu0  ;;  %v2906_v28 = vadd.f32 %v2122_v23, %v1277_v24 }
 0x13f   :  { %v2060_v30 = vpop.f32.mrb[37].mxu0  ;;  %v2123_v31 = vpop.f32.mrb[36].mxu1 }
 0x140   :  { %v2061_v32 = vadd.f32 %v2060_v30, %v2059_v26  ;;  %v2062_v33 = vpop.f32.mrb[38].mxu0  ;;  %v2124_v34 = vpop.f32.mrb[37].mxu1 }
 0x141   :  { %v2063_v35 = vpop.f32.mrb[39].mxu0  ;;  %v2125_v37 = vadd.f32 %v2124_v34, %v2123_v31  ;;  %v2126_v39 = vpop.f32.mrb[38].mxu1 }
 0x142   :  { %v1282_v27 = vadd.f32 %v2061_v32, %v2868_v41  ;;  %v2064_v40 = vadd.f32 %v2063_v35, %v2062_v33  ;;  %v2127_v42 = vpop.f32.mrb[39].mxu1 }
 0x143   :  { %v2128_v44 = vadd.f32 %v2127_v42, %v2126_v39 }
 0x144   :  { %v1285_v29 = vadd.f32 %v2064_v40, %v2870_v43  ;;  %v2910_v45 = vadd.f32 %v2125_v37, %v1282_v27 }
 0x146   :  { %v2065_v46 = vpop.f32.mrb[40].mxu0  ;;  %v2912_v47 = vadd.f32 %v2128_v44, %v1285_v29 }
 0x147   :  { %v2066_v48 = vpop.f32.mrb[41].mxu0  ;;  %v2129_v49 = vpop.f32.mrb[40].mxu1 }
 0x148   :  { %v2067_v50 = vadd.f32 %v2066_v48, %v2065_v46  ;;  %v2068_v51 = vpop.f32.mrb[42].mxu0  ;;  %v2130_v53 = vpop.f32.mrb[41].mxu1 }
 0x149   :  { %v2069_v56 = vpop.f32.mrb[43].mxu0  ;;  %v2131_v58 = vadd.f32 %v2130_v53, %v2129_v49  ;;  %v2132_v59 = vpop.f32.mrb[42].mxu1 }
 0x14a   :  { %v1290_v41 = vadd.f32 %v2067_v50, %v2872_v55  ;;  %v2070_v60 = vadd.f32 %v2069_v56, %v2068_v51  ;;  %v2133_v61 = vpop.f32.mrb[43].mxu1 }
 0x14b   :  { %v2134_v62 = vadd.f32 %v2133_v61, %v2132_v59 }
 0x14c   :  { %v1293_v43 = vadd.f32 %v2070_v60, %v2874_v57  ;;  %v2916_v63 = vadd.f32 %v2131_v58, %v1290_v41 }
 0x14e   :  { %v2071_v0 = vpop.f32.mrb[44].mxu0  ;;  %v2918_v1 = vadd.f32 %v2134_v62, %v1293_v43 }
 0x14f   :  { %v2072_v2 = vpop.f32.mrb[45].mxu0  ;;  %v2135_v3 = vpop.f32.mrb[44].mxu1 }
 0x150   :  { %v2073_v5 = vadd.f32 %v2072_v2, %v2071_v0  ;;  %v2074_v9 = vpop.f32.mrb[46].mxu0  ;;  %v2136_v10 = vpop.f32.mrb[45].mxu1 }
 0x151   :  { %v2075_v11 = vpop.f32.mrb[47].mxu0  ;;  %v2137_v12 = vadd.f32 %v2136_v10, %v2135_v3  ;;  %v2138_v13 = vpop.f32.mrb[46].mxu1 }
 0x152   :  { %v1298_v55 = vadd.f32 %v2073_v5, %v2882_v6  ;;  %v2076_v14 = vadd.f32 %v2075_v11, %v2074_v9  ;;  %v2139_v15 = vpop.f32.mrb[47].mxu1 }
 0x153   :  { %v2140_v16 = vadd.f32 %v2139_v15, %v2138_v13 }
 0x154   :  { %v1301_v57 = vadd.f32 %v2076_v14, %v2884_v8  ;;  %v2922_v17 = vadd.f32 %v2137_v12, %v1298_v55 }
 0x156   :  { %v2077_v18 = vpop.f32.mrb[48].mxu0  ;;  %v2924_v19 = vadd.f32 %v2140_v16, %v1301_v57 }
 0x157   :  { %v2078_v21 = vpop.f32.mrb[49].mxu0  ;;  %v2141_v23 = vpop.f32.mrb[48].mxu1 }
 0x158   :  { %v2079_v24 = vadd.f32 %v2078_v21, %v2077_v18  ;;  %v2080_v26 = vpop.f32.mrb[50].mxu0  ;;  %v2142_v30 = vpop.f32.mrb[49].mxu1 }
 0x159   :  { %v2081_v31 = vpop.f32.mrb[51].mxu0  ;;  %v2143_v32 = vadd.f32 %v2142_v30, %v2141_v23  ;;  %v2144_v33 = vpop.f32.mrb[50].mxu1 }
 0x15a   :  { %v1306_v6 = vadd.f32 %v2079_v24, %v2886_v20  ;;  %v2082_v34 = vadd.f32 %v2081_v31, %v2080_v26  ;;  %v2145_v35 = vpop.f32.mrb[51].mxu1 }
 0x15b   :  { %v2146_v37 = vadd.f32 %v2145_v35, %v2144_v33 }
 0x15c   :  { %v1309_v8 = vadd.f32 %v2082_v34, %v2888_v22  ;;  %v1403_v39 = vadd.f32 %v2143_v32, %v1306_v6 }
 0x15e   :  { %v2083_v27 = vpop.f32.mrb[52].mxu0  ;;  %v2928_v40 = vadd.f32 %v2146_v37, %v1309_v8 }
 0x15f   :  { %v2084_v42 = vpop.f32.mrb[53].mxu0  ;;  %v2147_v44 = vpop.f32.mrb[52].mxu1 }
 0x160   :  { %v2085_v29 = vadd.f32 %v2084_v42, %v2083_v27  ;;  %v2086_v46 = vpop.f32.mrb[54].mxu0  ;;  %v2148_v48 = vpop.f32.mrb[53].mxu1 }
 0x161   :  { %v2087_v49 = vpop.f32.mrb[55].mxu0  ;;  %v2149_v50 = vadd.f32 %v2148_v48, %v2147_v44  ;;  %v2150_v51 = vpop.f32.mrb[54].mxu1 }
 0x162   :  { %v1314_v53 = vadd.f32 %v2085_v29, %v2890_v36  ;;  %v2088_v20 = vadd.f32 %v2087_v49, %v2086_v46  ;;  %v2151_v56 = vpop.f32.mrb[55].mxu1 }
 0x163   :  { %v2152_v58 = vadd.f32 %v2151_v56, %v2150_v51 }
 0x164   :  { %v1317_v59 = vadd.f32 %v2088_v20, %v2892_v38  ;;  %v1411_v22 = vadd.f32 %v2149_v50, %v1314_v53 }
 0x166   :  { %v2089_v41 = vpop.f32.mrb[56].mxu0  ;;  %v1414_v60 = vadd.f32 %v2152_v58, %v1317_v59 }
 0x167   :  { %v2090_v61 = vpop.f32.mrb[57].mxu0  ;;  %v2153_v62 = vpop.f32.mrb[56].mxu1 }
 0x168   :  { %v2091_v43 = vadd.f32 %v2090_v61, %v2089_v41  ;;  %v2092_v0 = vpop.f32.mrb[58].mxu0  ;;  %v2154_v2 = vpop.f32.mrb[57].mxu1 }
 0x169   :  { %v2093_v3 = vpop.f32.mrb[59].mxu0  ;;  %v2155_v5 = vadd.f32 %v2154_v2, %v2153_v62  ;;  %v2156_v9 = vpop.f32.mrb[58].mxu1 }
 0x16a   :  { %v1322_v10 = vadd.f32 %v2091_v43, %v2894_v52  ;;  %v2094_v11 = vadd.f32 %v2093_v3, %v2092_v0  ;;  %v2157_v36 = vpop.f32.mrb[59].mxu1 }
 0x16b   :  { %v2158_v12 = vadd.f32 %v2157_v36, %v2156_v9 }
 0x16c   :  { %v1325_v13 = vadd.f32 %v2094_v11, %v2896_v54  ;;  %v1419_v55 = vadd.f32 %v2155_v5, %v1322_v10 }
 0x16e   :  { %v2095_v38 = vpop.f32.mrb[60].mxu0  ;;  %v2934_v14 = vadd.f32 %v2158_v12, %v1325_v13 }
 0x16f   :  { %v2096_v15 = vpop.f32.mrb[61].mxu0  ;;  %v2159_v16 = vpop.f32.mrb[60].mxu1 }
 0x170   :  { %v2097_v57 = vadd.f32 %v2096_v15, %v2095_v38  ;;  %v2098_v18 = vpop.f32.mrb[62].mxu0  ;;  %v2160_v21 = vpop.f32.mrb[61].mxu1 }
 0x171   :  { %v2099_v23 = vpop.f32.mrb[63].mxu0  ;;  %v2161_v24 = vadd.f32 %v2160_v21, %v2159_v16  ;;  %v2162_v26 = vpop.f32.mrb[62].mxu1 }
 0x172   :  { %v1330_v30 = vadd.f32 %v2097_v57, %v2898_v4  ;;  %v2100_v52 = vadd.f32 %v2099_v23, %v2098_v18  ;;  %v2163_v31 = vpop.f32.mrb[63].mxu1 }
 0x173   :  { %v2164_v32 = vadd.f32 %v2163_v31, %v2162_v26 }
 0x174   :  { %v1333_v33 = vadd.f32 %v2100_v52, %v2900_v7  ;;  %v1427_v54 = vadd.f32 %v2161_v24, %v1330_v30 }
 0x176   :  { %v2199_v6 = vpop.f32.mrb[64].mxu0  ;;  %v1430_v34 = vadd.f32 %v2164_v32, %v1333_v33 }
 0x177   :  { %v1476_v35 = vadd.f32 %v2199_v6, %v2910_v45  ;;  %v2207_v37 = vpop.f32.mrb[64].mxu1  ;;  %v1467_v8 = vpop.f32.mrb[65].mxu0 }
 0x178   :  { %v2939_v27 = vadd.f32 %v2207_v37, %v1411_v22  ;;  %v1468_v42 = vadd.f32 %v1467_v8, %v2904_v25  ;;  %v1499_v44 = vpop.f32.mrb[65].mxu1  ;;  %v2200_v29 = vpop.f32.mrb[66].mxu0 }
 0x179   :  { %v2942_v46 = vadd.f32 %v1499_v44, %v1403_v39  ;;  %v1479_v4 = vadd.f32 %v2200_v29, %v2912_v47  ;;  %v2208_v48 = vpop.f32.mrb[66].mxu1  ;;  %v1470_v49 = vpop.f32.mrb[67].mxu0  ;;  %v1557_v59 = vmul.f32 %v1476_v35, %v1476_v35 }
 0x17a   :  { %v2945_v7 = vadd.f32 %v2208_v48, %v1414_v60  ;;  %v1471_v50 = vadd.f32 %v1470_v49, %v2906_v28  ;;  %v1502_v51 = vpop.f32.mrb[67].mxu1  ;;  %v1555_v20 = vmul.f32 %v1468_v42, %v1468_v42  ;;  %v1565_v8 = vmul.f32 %v2939_v27, %v2939_v27 }
 0x17b   :  { %v1870_v45 = vpack.c.bf16 %v1479_v4, %v1476_v35  ;;  %v1503_v53 = vadd.f32 %v1502_v51, %v2928_v40  ;;  %v1558_v41 = vmul.f32 %v1479_v4, %v1479_v4  ;;  %v1563_v33 = vmul.f32 %v2942_v46, %v2942_v46 }
 0x17c   :  { %v1890_v25 = vpack.c.bf16 %v2945_v7, %v2939_v27  ;;  %v1531_v56 = vadd.f32 %v1471_v50, %v1468_v42  ;;  %v1556_v58 = vmul.f32 %v1471_v50, %v1471_v50  ;;  %v1865_v47 = vpack.c.bf16 %v1471_v50, %v1468_v42 }
 0x17d   :  { %1902 = vst [vmem:[%s3006_s2 + $0x8] sm:$0xff] %v1870_v45   ;;  %v1885_v39 = vpack.c.bf16 %v1503_v53, %v2942_v46  ;;  %v1566_v29 = vmul.f32 %v2945_v7, %v2945_v7 }
 0x17e   :  { %1906 = vst [vmem:[%s3006_s2 + $0x28] sm:$0xff] %v1890_v25   ;;  %v1532_v28 = vadd.f32 %v1531_v56, %v1476_v35  ;;  %v1571_v40 = vadd.f32 %v1556_v58, %v1555_v20  ;;  %v2203_v22 = vpop.f32.mrb[68].mxu0  ;;  %1866 = vst [vmem:[%s3006_s2] sm:$0xff] %v1865_v47  }
 0x17f   :  { %1905 = vst [vmem:[%s3006_s2 + $0x20] sm:$0xff] %v1885_v39   ;;  %v1492_v60 = vadd.f32 %v2203_v22, %v2922_v17  ;;  %v2211_v61 = vpop.f32.mrb[68].mxu1  ;;  %v1483_v62 = vpop.f32.mrb[69].mxu0 }
 0x180   :  { %v1572_v43 = vadd.f32 %v1571_v40, %v1557_v59  ;;  %v1524_v0 = vadd.f32 %v2211_v61, %v1427_v54  ;;  %v1484_v2 = vadd.f32 %v1483_v62, %v2916_v63  ;;  %v1533_v3 = vadd.f32 %v1532_v28, %v1479_v4  ;;  %v1515_v5 = vpop.f32.mrb[69].mxu1  ;;  %v2204_v9 = vpop.f32.mrb[70].mxu0 }
 0x181   :  { %v1516_v10 = vadd.f32 %v1515_v5, %v1419_v55  ;;  %v1495_v11 = vadd.f32 %v2204_v9, %v2924_v19  ;;  %v2212_v36 = vpop.f32.mrb[70].mxu1  ;;  %v1486_v12 = vpop.f32.mrb[71].mxu0  ;;  %v1561_v30 = vmul.f32 %v1492_v60, %v1492_v60 }
 0x182   :  { %v1534_v13 = vadd.f32 %v1533_v3, %v1484_v2  ;;  %v1559_v38 = vmul.f32 %v1484_v2, %v1484_v2  ;;  %v1573_v15 = vadd.f32 %v1572_v43, %v1558_v41  ;;  %v1518_v16 = vpop.f32.mrb[71].mxu1  ;;  %v1527_v17 = vadd.f32 %v2212_v36, %v1430_v34  ;;  %v1530_v43 = vld [vmem:[%s3004_s3] sm:$0x1] }
 0x183   :  { %v1880_v57 = vpack.c.bf16 %v1495_v11, %v1492_v60  ;;  %v1487_v21 = vadd.f32 %v1486_v12, %v2918_v1  ;;  %v1519_v23 = vadd.f32 %v1518_v16, %v2934_v14  ;;  %v1562_v1 = vmul.f32 %v1495_v11, %v1495_v11  ;;  %v1554_v3 = vld [vmem:[%s3005_s4] sm:$0x1] }
 0x184   :  { %v1574_v18 = vadd.f32 %v1573_v15, %v1559_v38  ;;  %v1900_v63 = vpack.c.bf16 %v1527_v17, %v1524_v0  ;;  %v1564_v34 = vmul.f32 %v1503_v53, %v1503_v53  ;;  %v1567_v49 = vmul.f32 %v1516_v10, %v1516_v10 }
 0x185   :  { %1904 = vst [vmem:[%s3006_s2 + $0x18] sm:$0xff] %v1880_v57   ;;  %v1535_v55 = vadd.f32 %v1534_v13, %v1487_v21  ;;  %v1560_v19 = vmul.f32 %v1487_v21, %v1487_v21  ;;  %v1875_v24 = vpack.c.bf16 %v1487_v21, %v1484_v2  ;;  %v1895_v26 = vpack.c.bf16 %v1519_v23, %v1516_v10 }
 0x186   :  { %1908 = vst [vmem:[%s3006_s2 + $0x38] sm:$0xff] %v1900_v63   ;;  %v1568_v45 = vmul.f32 %v1519_v23, %v1519_v23  ;;  %v1569_v25 = vmul.f32 %v1524_v0, %v1524_v0  ;;  %v1570_v58 = vmul.f32 %v1527_v17, %v1527_v17 }
 0x187   :  { %v1536_v52 = vadd.f32 %v1535_v55, %v1492_v60  ;;  %v1575_v31 = vadd.f32 %v1574_v18, %v1560_v19  ;;  %1903 = vst [vmem:[%s3006_s2 + $0x10] sm:$0xff] %v1875_v24   ;;  %1907 = vst [vmem:[%s3006_s2 + $0x30] sm:$0xff] %v1895_v26  }
 0x189   :  { %v1537_v14 = vadd.f32 %v1536_v52, %v1495_v11  ;;  %v1576_v32 = vadd.f32 %v1575_v31, %v1561_v30 }
 0x18b   :  { %v1538_v54 = vadd.f32 %v1537_v14, %v2942_v46  ;;  %v1577_v6 = vadd.f32 %v1576_v32, %v1562_v1 }
 0x18d   :  { %v1578_v35 = vadd.f32 %v1577_v6, %v1563_v33  ;;  %v1539_v37 = vadd.f32 %v1538_v54, %v1503_v53 }
 0x18f   :  { %v1540_v42 = vadd.f32 %v1539_v37, %v2939_v27  ;;  %v1579_v44 = vadd.f32 %v1578_v35, %v1564_v34 }
 0x191   :  { %v1541_v4 = vadd.f32 %v1540_v42, %v2945_v7  ;;  %v1580_v48 = vadd.f32 %v1579_v44, %v1565_v8 }
 0x193   :  { %v1542_v50 = vadd.f32 %v1541_v4, %v1516_v10  ;;  %v1581_v51 = vadd.f32 %v1580_v48, %v1566_v29 }
 0x195   :  { %v1543_v46 = vadd.f32 %v1542_v50, %v1519_v23  ;;  %v1582_v20 = vadd.f32 %v1581_v51, %v1567_v49 }
 0x197   :  { %v1544_v53 = vadd.f32 %v1543_v46, %v1524_v0  ;;  %v1583_v56 = vadd.f32 %v1582_v20, %v1568_v45 }
 0x199   :  { %v1545_v47 = vadd.f32 %v1544_v53, %v1527_v17  ;;  %v1584_v39 = vadd.f32 %v1583_v56, %v1569_v25 }
 0x19b   :  { %v1546_v27 = vrot.slane %v1545_v47, 4  ;;  %v1585_v59 = vadd.f32 %v1584_v39, %v1570_v58 }
 0x19d   :  { %v1547_v28 = vadd.f32 %v1546_v27, %v1545_v47  ;;  %v1586_v40 = vrot.slane %v1585_v59, 4 }
 0x19f   :  { %v1548_v22 = vrot.slane %v1547_v28, 2  ;;  %v1587_v41 = vadd.f32 %v1586_v40, %v1585_v59 }
 0x1a1   :  { %v1549_v7 = vadd.f32 %v1548_v22, %v1547_v28  ;;  %v1588_v60 = vrot.slane %v1587_v41, 2 }
 0x1a3   :  { %v1550_v61 = vrot.slane %v1549_v7, 1  ;;  %v1589_v62 = vadd.f32 %v1588_v60, %v1587_v41 }
 0x1a5   :  { %v1551_v2 = vadd.f32 %v1550_v61, %v1549_v7  ;;  %v1590_v0 = vrot.slane %v1589_v62, 1 }
 0x1a7   :  { %v1552_v5 = vadd.f32 %v1551_v2, %v1530_v43  ;;  %v1591_v9 = vadd.f32 %v1590_v0, %v1589_v62 }
 0x1a9   :  { %1553 = vst [vmem:[%s3004_s3] sm:$0x1] %v1552_v5  ;;  %v1592_v10 = vadd.f32 %v1591_v9, %v1554_v3 }
 0x1ab   :  { %1593 = vst [vmem:[%s3005_s4] sm:$0x1] %v1592_v10 }

</bundles_post_ra>
